<compile_context>
chip_gen: v6e
topology: v6e:2x2x1
jax: 0.10.0
libtpu: 0.0.40
codegen_flags: <defaults>
</compile_context>

<pallas_src>
import math

import jax
import jax.numpy as jnp
from jax.experimental import pallas as pl
from jax.experimental.pallas import tpu as pltpu

# ---------------- configuration (small demo shapes) ----------------
B = 2            # batch
C = 4            # image channels
IMG = 16         # spatial size -> S = IMG*IMG memory tokens
S = IMG * IMG
T = 8            # context (gaze) sequence length
L = 6            # text sequence length
H = 32           # hidden_dim
NH = 4           # attention heads
HD = H // NH
FF = 64          # feed-forward dim
V = 16           # vocab size
HEAD_W = 8       # head-projection width: tok(3), x_mu, x_lv, y_mu, y_lv, pad

AUXW = max(8, T)                          # packed per-batch side-input lane width
AUX_ROWS = T + 1                          # rows 0..T-1: eps(x,y); row T: tgt bias
OUT_W = 128                               # single lane-dense output slab width
OUT_ROWS = ((T + 1 + L + 7) // 8) * 8     # head rows + box row + next-word rows

_F32 = jnp.float32
_BF16 = jnp.bfloat16


def _mm(a, b):
    """2-D matmul on the MXU: bf16 operands, f32 accumulation."""
    return jnp.dot(a.astype(_BF16), b.astype(_BF16), preferred_element_type=_F32)


# ---------------- fused RefGaze kernel (one batch element per grid step) ----------------
def _refgaze_kernel(px_ref, ctx_ref, temb_ref, aux_ref,
                    w_imgT_ref, b_imgT_ref, w_box_ref, b_box_ref,
                    w_vocab_ref, b_vocab_ref,
                    wsa_in_ref, bsa_in_ref, wsa_out_ref, bsa_out_ref,
                    wca_q_ref, bca_q_ref, wca_kvT_ref, bca_kvT_ref,
                    wca_out_ref, bca_out_ref,
                    w1_ref, b1_ref, w2_ref, b2_ref,
                    lng_ref, lnb_ref, w_head_ref, b_head_ref,
                    out_ref):
    scale = 1.0 / math.sqrt(HD)

    def layer_norm(v, idx):
        mu = jnp.mean(v, axis=-1, keepdims=True)
        var = jnp.mean((v - mu) ** 2, axis=-1, keepdims=True)
        vn = (v - mu) * jax.lax.rsqrt(var + 1e-5)
        return vn * lng_ref[idx:idx + 1, :] + lnb_ref[idx:idx + 1, :]

    def split_heads(z):
        # (T, H) -> (NH, T, HD): one reshape + one dim swap (no slice/concat fan-out).
        return pltpu.einshape("qhd->hqd", z.reshape(T, NH, HD))

    def merge_heads(oh):
        # (NH, T, HD) -> (T, H): merged once, then a single (H, H) output projection.
        return pltpu.einshape("hqd->qhd", oh).reshape(T, H)

    # ---- packed per-batch side inputs ----
    aux = aux_ref[0]                                      # (T+1, AUXW)
    eps = aux[0:T, 0:2]                                   # reparameterize noise (T, 2)
    tb = aux[T:T + 1, 0:T]                                # tgt key-padding bias (1, T)

    # ---- VGCore backbone: 1x1 conv-as-matmul, S kept lane-major ----
    featT = _mm(w_imgT_ref[...], px_ref[0]) + b_imgT_ref[...]     # (H, S)
    featT = jnp.maximum(featT, 0.0)                               # image memory, VMEM-resident

    pooled = jnp.mean(featT, axis=1, keepdims=True)               # (H, 1) lane reduction
    box_row = jax.nn.sigmoid(
        jnp.sum(pooled * w_box_ref[...], axis=0, keepdims=True) + b_box_ref[...])  # (1, 4)

    # ---- next-word head on text embeddings ----
    nw = _mm(temb_ref[0], w_vocab_ref[...]) + b_vocab_ref[...]    # (L, V)

    # ---- transformer decoder layer (post-norm, relu) ----
    x = ctx_ref[0]                                                # (T, H)

    # self-attention: one fused QKV matmul, head-batched attention.
    qkv = _mm(x, wsa_in_ref[...]) + bsa_in_ref[...]               # (T, 3H)
    qh = split_heads(qkv[:, 0:H])
    kh = split_heads(qkv[:, H:2 * H])
    vh = split_heads(qkv[:, 2 * H:3 * H])
    s = jnp.einsum('hqd,hkd->hqk', qh.astype(_BF16), kh.astype(_BF16),
                   preferred_element_type=_F32) * scale
    s = s + tb[None, :, :]                                        # key-padding bias
    p = jax.nn.softmax(s, axis=-1)
    oh = jnp.einsum('hqk,hkd->hqd', p.astype(_BF16), vh.astype(_BF16),
                    preferred_element_type=_F32)                  # (NH, T, HD)
    sa = _mm(merge_heads(oh), wsa_out_ref[...]) + bsa_out_ref[...]
    x = layer_norm(x + sa, 0)

    # cross-attention over VGCore image memory (memory mask all-False -> no bias added).
    # TODO(synk): gate an additive memory key-padding bias behind a flag if VGCore can
    # emit a non-trivial memory_key_padding_mask.
    q = _mm(x, wca_q_ref[...]) + bca_q_ref[...]                   # (T, H)
    qh = split_heads(q)                                           # (NH, T, HD)
    kvT = _mm(wca_kvT_ref[...], featT) + bca_kvT_ref[...]         # (2H, S)
    kvT = kvT.reshape(2, NH, HD, S)                               # tile-aligned leading split
    s = jnp.einsum('hqd,hds->hqs', qh.astype(_BF16), kvT[0].astype(_BF16),
                   preferred_element_type=_F32) * scale           # (NH, T, S)
    p = jax.nn.softmax(s, axis=-1)
    oh = jnp.einsum('hqs,hds->hqd', p.astype(_BF16), kvT[1].astype(_BF16),
                    preferred_element_type=_F32)                  # (NH, T, HD)
    ca = _mm(merge_heads(oh), wca_out_ref[...]) + bca_out_ref[...]
    x = layer_norm(x + ca, 1)

    # feed-forward block, activation='relu'.
    h1 = jnp.maximum(_mm(x, w1_ref[...]) + b1_ref[...], 0.0)
    x = layer_norm(x + _mm(h1, w2_ref[...]) + b2_ref[...], 2)

    # ---- RefGaze heads (dropout == identity in eval mode) ----
    hcat = _mm(x, w_head_ref[...]) + b_head_ref[...]              # (T, HEAD_W)
    tok = hcat[:, 0:3]
    tmax = jnp.max(tok, axis=-1, keepdims=True)
    lse = tmax + jnp.log(jnp.sum(jnp.exp(tok - tmax), axis=-1, keepdims=True))
    # reparameterize(mu, logvar) = mu + eps * exp(0.5*logvar), then ReLU.
    x_g = jnp.maximum(hcat[:, 3:4] + eps[:, 0:1] * jnp.exp(0.5 * hcat[:, 4:5]), 0.0)
    y_g = jnp.maximum(hcat[:, 5:6] + eps[:, 1:2] * jnp.exp(0.5 * hcat[:, 6:7]), 0.0)

    # ---- single lane-dense output slab, one unmasked store ----
    head_rows = jnp.concatenate(
        [tok - lse, x_g, y_g, jnp.zeros((T, OUT_W - 5), _F32)], axis=-1)       # (T, 128)
    box_rows = jnp.concatenate([box_row, jnp.zeros((1, OUT_W - 4), _F32)], axis=-1)
    nw_rows = jnp.concatenate([nw, jnp.zeros((L, OUT_W - V), _F32)], axis=-1)
    blocks = [head_rows, box_rows, nw_rows]
    n_pad = OUT_ROWS - (T + 1 + L)
    if n_pad:
        blocks.append(jnp.zeros((n_pad, OUT_W), _F32))
    out_ref[0] = jnp.concatenate(blocks, axis=0)


def _wspec(shape):
    zeros = (0,) * len(shape)
    return pl.BlockSpec(shape, lambda b: zeros)


# ---------------- RefGaze forward (JAX wrapper) ----------------
def refgaze_forward(params, img_data, text_data, context, context_padding_mask, eps):
    """img_data NCHW, context (T, B, H) (batch_first=False), eps (B, T, 2)."""
    p = params

    # host-side layout plumbing (tiny XLA ops): batch-major, lane-dense inputs.
    px = img_data.reshape(B, C, S)                           # (B, C, S): S lane-major
    ctx_b = context.transpose(1, 0, 2)                       # (B, T, H)
    text_emb = p['embed'][text_data]                         # (B, L, H)

    # pack per-batch side inputs (reparam noise + tgt key-padding bias) into one block.
    aux = jnp.zeros((B, AUX_ROWS, AUXW), _F32)
    aux = aux.at[:, 0:T, 0:2].set(eps.astype(_F32))
    aux = aux.at[:, T, 0:T].set(jnp.where(context_padding_mask, -1e9, 0.0).astype(_F32))

    # NOTE: weights assumed pre-transposed (in_features, out_features); a real
    # PyTorch checkpoint (e.g. nn.MultiheadAttention in_proj_weight (3H, H)) must be
    # transposed / reordered before use.
    weight_args = (
        p['w_img'].T, p['b_img'].reshape(H, 1),              # (H, C), (H, 1)
        p['w_box'], p['b_box'],
        p['w_vocab'], p['b_vocab'],
        p['wsa_in'], p['bsa_in'], p['wsa_out'], p['bsa_out'],
        p['wca_in'][:, 0:H], p['bca_in'][:, 0:H],            # cross-attn Q proj
        p['wca_in'][:, H:3 * H].T,                           # cross-attn KV proj, (2H, H)
        p['bca_in'][0, H:3 * H].reshape(2 * H, 1),           # (2H, 1)
        p['wca_out'], p['bca_out'],
        p['w1'], p['b1'], p['w2'], p['b2'],
        p['ln_g'], p['ln_b'], p['w_head'], p['b_head'],
    )

    # TODO(synk): weight BlockSpecs are grid-constant; mark pipeline_mode=pl.Buffered(1)
    # at production shapes so weights are not double-buffered under the v7x 64 MiB cap.
    in_specs = ([
        pl.BlockSpec((1, C, S), lambda b: (b, 0, 0)),            # pixel tokens (lane-major S)
        pl.BlockSpec((1, T, H), lambda b: (b, 0, 0)),            # context
        pl.BlockSpec((1, L, H), lambda b: (b, 0, 0)),            # text embeddings
        pl.BlockSpec((1, AUX_ROWS, AUXW), lambda b: (b, 0, 0)),  # packed noise + tgt bias
    ] + [_wspec(w.shape) for w in weight_args])

    # TODO(synk): on single-TC v5e/v6e, fold B into matmul rows (grid=()) to drop the
    # per-step pipeline overhead; grid=(B,) + "parallel" shards across v7x's 2 TCs.
    slab = pl.pallas_call(
        _refgaze_kernel,
        grid=(B,),
        out_shape=jax.ShapeDtypeStruct((B, OUT_ROWS, OUT_W), _F32),
        in_specs=in_specs,
        out_specs=pl.BlockSpec((1, OUT_ROWS, OUT_W), lambda b: (b, 0, 0)),
        compiler_params=pltpu.CompilerParams(
            dimension_semantics=("parallel",)),
    )(px, ctx_b, text_emb, aux, *weight_args)

    # slice the packed slab apart (free XLA plumbing).
    tok_logprob = slab[:, 0:T, 0:3]          # log_softmax(token_predictor).permute(1,0,2)
    x_gaze = slab[:, 0:T, 3:4]               # relu(reparameterize(x)).permute(1,0,2)
    y_gaze = slab[:, 0:T, 4:5]               # relu(reparameterize(y)).permute(1,0,2)
    pred_box = slab[:, T, 0:4]               # (B, 4)
    nextword = slab[:, T + 1:T + 1 + L, 0:V]
    # matches: (pred_box, nextword, target, token, x, y)
    return pred_box, nextword, text_data, tok_logprob, x_gaze, y_gaze


# ---------------- deterministic parameter init ----------------
def init_params(key):
    ks = jax.random.split(key, 12)

    def w(k, shape, scale=0.05):
        return (scale * jax.random.normal(k, shape)).astype(_F32)

    return dict(
        w_img=w(ks[0], (C, H)),  b_img=jnp.zeros((1, H), _F32),
        w_box=w(ks[1], (H, 4)),  b_box=jnp.zeros((1, 4), _F32),
        embed=w(ks[2], (V, H), 1.0),
        w_vocab=w(ks[3], (H, V)), b_vocab=jnp.zeros((1, V), _F32),
        wsa_in=w(ks[4], (H, 3 * H)), bsa_in=jnp.zeros((1, 3 * H), _F32),
        wsa_out=w(ks[5], (H, H)),    bsa_out=jnp.zeros((1, H), _F32),
        wca_in=w(ks[6], (H, 3 * H)), bca_in=jnp.zeros((1, 3 * H), _F32),
        wca_out=w(ks[7], (H, H)),    bca_out=jnp.zeros((1, H), _F32),
        w1=w(ks[8], (H, FF)), b1=jnp.zeros((1, FF), _F32),
        w2=w(ks[9], (FF, H)), b2=jnp.zeros((1, H), _F32),
        ln_g=jnp.ones((3, H), _F32), ln_b=jnp.zeros((3, H), _F32),
        # 7 real head columns (token 3, x_mu, x_logvar, y_mu, y_logvar) + 1 lane pad
        w_head=w(ks[10], (H, HEAD_W)).at[:, 7].set(0.0),
        b_head=jnp.zeros((1, HEAD_W), _F32),
    )


if __name__ == "__main__":
    key = jax.random.PRNGKey(0)
    k_param, k_img, k_ctx, k_txt, k_eps = jax.random.split(key, 5)

    params = init_params(k_param)
    img_data = jax.random.normal(k_img, (B, C, IMG, IMG), jnp.float32)
    text_data = jax.random.randint(k_txt, (B, L), 0, V)
    context = jax.random.normal(k_ctx, (T, B, H), jnp.float32)
    context_padding_mask = jnp.zeros((B, T), dtype=bool).at[1, T - 1].set(True)
    # reparameterize noise drawn outside the kernel (deterministic randn_like):
    # [..., 0] is eps_x, [..., 1] is eps_y.
    eps = jax.random.normal(k_eps, (B, T, 2), jnp.float32)

    fwd = jax.jit(refgaze_forward)
    outs = fwd(params, img_data, text_data, context, context_padding_mask, eps)
    outs = jax.block_until_ready(outs)
    pred_box, nextword, target, tok_logprob, x_gaze, y_gaze = outs

    assert pred_box.shape == (B, 4)
    assert nextword.shape == (B, L, V)
    assert target.shape == (B, L)
    assert tok_logprob.shape == (B, T, 3)
    assert x_gaze.shape == (B, T, 1) and y_gaze.shape == (B, T, 1)
    print("KERNEL_OK")
</pallas_src>

<mosaic_0001>
module attributes {stable_mosaic.version = 11 : i64} {
  func.func @_refgaze_kernel(%arg0: i32, %arg1: memref<1x4x256xf32, #tpu.memory_space<vmem>>, %arg2: memref<1x8x32xf32, #tpu.memory_space<vmem>>, %arg3: memref<1x6x32xf32, #tpu.memory_space<vmem>>, %arg4: memref<1x9x8xf32, #tpu.memory_space<vmem>>, %arg5: memref<32x4xf32, #tpu.memory_space<vmem>>, %arg6: memref<32x1xf32, #tpu.memory_space<vmem>>, %arg7: memref<32x4xf32, #tpu.memory_space<vmem>>, %arg8: memref<1x4xf32, #tpu.memory_space<vmem>>, %arg9: memref<32x16xf32, #tpu.memory_space<vmem>>, %arg10: memref<1x16xf32, #tpu.memory_space<vmem>>, %arg11: memref<32x96xf32, #tpu.memory_space<vmem>>, %arg12: memref<1x96xf32, #tpu.memory_space<vmem>>, %arg13: memref<32x32xf32, #tpu.memory_space<vmem>>, %arg14: memref<1x32xf32, #tpu.memory_space<vmem>>, %arg15: memref<32x32xf32, #tpu.memory_space<vmem>>, %arg16: memref<1x32xf32, #tpu.memory_space<vmem>>, %arg17: memref<64x32xf32, #tpu.memory_space<vmem>>, %arg18: memref<64x1xf32, #tpu.memory_space<vmem>>, %arg19: memref<32x32xf32, #tpu.memory_space<vmem>>, %arg20: memref<1x32xf32, #tpu.memory_space<vmem>>, %arg21: memref<32x64xf32, #tpu.memory_space<vmem>>, %arg22: memref<1x64xf32, #tpu.memory_space<vmem>>, %arg23: memref<64x32xf32, #tpu.memory_space<vmem>>, %arg24: memref<1x32xf32, #tpu.memory_space<vmem>>, %arg25: memref<3x32xf32, #tpu.memory_space<vmem>>, %arg26: memref<3x32xf32, #tpu.memory_space<vmem>>, %arg27: memref<32x8xf32, #tpu.memory_space<vmem>>, %arg28: memref<1x8xf32, #tpu.memory_space<vmem>>, %arg29: memref<1x16x128xf32, #tpu.memory_space<vmem>>) attributes {dimension_semantics = [#tpu.dimension_semantics<parallel>], iteration_bounds = array<i64: 2>, scalar_prefetch = 0 : i64, scratch_operands = 0 : i64, tpu.core_type = #tpu.core_type<tc>, window_params = [{transform_indices = @transform_0, window_bounds = array<i64: 1, 4, 256>}, {transform_indices = @transform_1, window_bounds = array<i64: 1, 8, 32>}, {transform_indices = @transform_2, window_bounds = array<i64: 1, 6, 32>}, {transform_indices = @transform_3, window_bounds = array<i64: 1, 9, 8>}, {pipeline_mode = #tpu.pipeline_mode<synchronous>, transform_indices = @transform_4, window_bounds = array<i64: 32, 4>}, {pipeline_mode = #tpu.pipeline_mode<synchronous>, transform_indices = @transform_5, window_bounds = array<i64: 32, 1>}, {pipeline_mode = #tpu.pipeline_mode<synchronous>, transform_indices = @transform_6, window_bounds = array<i64: 32, 4>}, {pipeline_mode = #tpu.pipeline_mode<synchronous>, transform_indices = @transform_7, window_bounds = array<i64: 1, 4>}, {pipeline_mode = #tpu.pipeline_mode<synchronous>, transform_indices = @transform_8, window_bounds = array<i64: 32, 16>}, {pipeline_mode = #tpu.pipeline_mode<synchronous>, transform_indices = @transform_9, window_bounds = array<i64: 1, 16>}, {pipeline_mode = #tpu.pipeline_mode<synchronous>, transform_indices = @transform_10, window_bounds = array<i64: 32, 96>}, {pipeline_mode = #tpu.pipeline_mode<synchronous>, transform_indices = @transform_11, window_bounds = array<i64: 1, 96>}, {pipeline_mode = #tpu.pipeline_mode<synchronous>, transform_indices = @transform_12, window_bounds = array<i64: 32, 32>}, {pipeline_mode = #tpu.pipeline_mode<synchronous>, transform_indices = @transform_13, window_bounds = array<i64: 1, 32>}, {pipeline_mode = #tpu.pipeline_mode<synchronous>, transform_indices = @transform_14, window_bounds = array<i64: 32, 32>}, {pipeline_mode = #tpu.pipeline_mode<synchronous>, transform_indices = @transform_15, window_bounds = array<i64: 1, 32>}, {pipeline_mode = #tpu.pipeline_mode<synchronous>, transform_indices = @transform_16, window_bounds = array<i64: 64, 32>}, {pipeline_mode = #tpu.pipeline_mode<synchronous>, transform_indices = @transform_17, window_bounds = array<i64: 64, 1>}, {pipeline_mode = #tpu.pipeline_mode<synchronous>, transform_indices = @transform_18, window_bounds = array<i64: 32, 32>}, {pipeline_mode = #tpu.pipeline_mode<synchronous>, transform_indices = @transform_19, window_bounds = array<i64: 1, 32>}, {pipeline_mode = #tpu.pipeline_mode<synchronous>, transform_indices = @transform_20, window_bounds = array<i64: 32, 64>}, {pipeline_mode = #tpu.pipeline_mode<synchronous>, transform_indices = @transform_21, window_bounds = array<i64: 1, 64>}, {pipeline_mode = #tpu.pipeline_mode<synchronous>, transform_indices = @transform_22, window_bounds = array<i64: 64, 32>}, {pipeline_mode = #tpu.pipeline_mode<synchronous>, transform_indices = @transform_23, window_bounds = array<i64: 1, 32>}, {pipeline_mode = #tpu.pipeline_mode<synchronous>, transform_indices = @transform_24, window_bounds = array<i64: 3, 32>}, {pipeline_mode = #tpu.pipeline_mode<synchronous>, transform_indices = @transform_25, window_bounds = array<i64: 3, 32>}, {pipeline_mode = #tpu.pipeline_mode<synchronous>, transform_indices = @transform_26, window_bounds = array<i64: 32, 8>}, {pipeline_mode = #tpu.pipeline_mode<synchronous>, transform_indices = @transform_27, window_bounds = array<i64: 1, 8>}, {transform_indices = @transform_28, window_bounds = array<i64: 1, 16, 128>}]} {
    %c0 = arith.constant 0 : index
    %c0_0 = arith.constant 0 : index
    %c0_1 = arith.constant 0 : index
    %0 = vector.load %arg4[%c0, %c0_0, %c0_1] : memref<1x9x8xf32, #tpu.memory_space<vmem>>, vector<1x9x8xf32>
    %1 = vector.shape_cast %0 : vector<1x9x8xf32> to vector<9x8xf32>
    %2 = vector.extract_strided_slice %1 {offsets = [0, 0], sizes = [8, 2], strides = [1, 1]} : vector<9x8xf32> to vector<8x2xf32>
    %3 = vector.extract_strided_slice %1 {offsets = [8, 0], sizes = [1, 8], strides = [1, 1]} : vector<9x8xf32> to vector<1x8xf32>
    %c0_2 = arith.constant 0 : index
    %c0_3 = arith.constant 0 : index
    %4 = vector.load %arg5[%c0_2, %c0_3] : memref<32x4xf32, #tpu.memory_space<vmem>>, vector<32x4xf32>
    %c0_4 = arith.constant 0 : index
    %c0_5 = arith.constant 0 : index
    %c0_6 = arith.constant 0 : index
    %5 = vector.load %arg1[%c0_4, %c0_5, %c0_6] : memref<1x4x256xf32, #tpu.memory_space<vmem>>, vector<1x4x256xf32>
    %6 = vector.shape_cast %5 : vector<1x4x256xf32> to vector<4x256xf32>
    %7 = arith.truncf %4 : vector<32x4xf32> to vector<32x4xbf16>
    %8 = arith.truncf %6 : vector<4x256xf32> to vector<4x256xbf16>
    %cst = arith.constant dense<0.000000e+00> : vector<32x256xf32>
    %9 = tpu.matmul %7, %8, %cst {dimension_numbers = #tpu.dot_dimension_numbers<[1], [0], [0], [1], [0, 0, 1, 1], [], []>} : vector<32x4xbf16>, vector<4x256xbf16>, vector<32x256xf32> -> vector<32x256xf32>
    %c0_7 = arith.constant 0 : index
    %c0_8 = arith.constant 0 : index
    %10 = vector.load %arg6[%c0_7, %c0_8] : memref<32x1xf32, #tpu.memory_space<vmem>>, vector<32x1xf32>
    %11 = vector.broadcast %10 : vector<32x1xf32> to vector<32x256xf32>
    %12 = arith.addf %9, %11 : vector<32x256xf32>
    %cst_9 = arith.constant 0.000000e+00 : f32
    %13 = vector.broadcast %cst_9 : f32 to vector<32x256xf32>
    %14 = arith.maximumf %12, %13 : vector<32x256xf32>
    %cst_10 = arith.constant dense<0.000000e+00> : vector<32xf32>
    %15 = vector.multi_reduction <add>, %14, %cst_10 [1] : vector<32x256xf32> to vector<32xf32>
    %16 = vector.shape_cast %15 : vector<32xf32> to vector<32x1xf32>
    %cst_11 = arith.constant 2.560000e+02 : f32
    %17 = vector.broadcast %cst_11 : f32 to vector<32x1xf32>
    %18 = arith.divf %16, %17 : vector<32x1xf32>
    %c0_12 = arith.constant 0 : index
    %c0_13 = arith.constant 0 : index
    %19 = vector.load %arg7[%c0_12, %c0_13] : memref<32x4xf32, #tpu.memory_space<vmem>>, vector<32x4xf32>
    %20 = vector.broadcast %18 : vector<32x1xf32> to vector<32x4xf32>
    %21 = arith.mulf %20, %19 : vector<32x4xf32>
    %cst_14 = arith.constant dense<0.000000e+00> : vector<4xf32>
    %22 = vector.multi_reduction <add>, %21, %cst_14 [0] : vector<32x4xf32> to vector<4xf32>
    %23 = vector.shape_cast %22 : vector<4xf32> to vector<1x4xf32>
    %c0_15 = arith.constant 0 : index
    %c0_16 = arith.constant 0 : index
    %24 = vector.load %arg8[%c0_15, %c0_16] : memref<1x4xf32, #tpu.memory_space<vmem>>, vector<1x4xf32>
    %25 = arith.addf %23, %24 : vector<1x4xf32>
    %26 = arith.negf %25 : vector<1x4xf32>
    %27 = math.exp %26 : vector<1x4xf32>
    %cst_17 = arith.constant 1.000000e+00 : f32
    %28 = vector.broadcast %cst_17 : f32 to vector<1x4xf32>
    %29 = arith.addf %28, %27 : vector<1x4xf32>
    %30 = arith.divf %28, %29 : vector<1x4xf32>
    %c0_18 = arith.constant 0 : index
    %c0_19 = arith.constant 0 : index
    %c0_20 = arith.constant 0 : index
    %31 = vector.load %arg3[%c0_18, %c0_19, %c0_20] : memref<1x6x32xf32, #tpu.memory_space<vmem>>, vector<1x6x32xf32>
    %32 = vector.shape_cast %31 : vector<1x6x32xf32> to vector<6x32xf32>
    %c0_21 = arith.constant 0 : index
    %c0_22 = arith.constant 0 : index
    %33 = vector.load %arg9[%c0_21, %c0_22] : memref<32x16xf32, #tpu.memory_space<vmem>>, vector<32x16xf32>
    %34 = arith.truncf %32 : vector<6x32xf32> to vector<6x32xbf16>
    %35 = arith.truncf %33 : vector<32x16xf32> to vector<32x16xbf16>
    %cst_23 = arith.constant dense<0.000000e+00> : vector<6x16xf32>
    %36 = tpu.matmul %34, %35, %cst_23 {dimension_numbers = #tpu.dot_dimension_numbers<[1], [0], [0], [1], [0, 0, 1, 1], [], []>} : vector<6x32xbf16>, vector<32x16xbf16>, vector<6x16xf32> -> vector<6x16xf32>
    %c0_24 = arith.constant 0 : index
    %c0_25 = arith.constant 0 : index
    %37 = vector.load %arg10[%c0_24, %c0_25] : memref<1x16xf32, #tpu.memory_space<vmem>>, vector<1x16xf32>
    %38 = vector.broadcast %37 : vector<1x16xf32> to vector<6x16xf32>
    %39 = arith.addf %36, %38 : vector<6x16xf32>
    %c0_26 = arith.constant 0 : index
    %c0_27 = arith.constant 0 : index
    %c0_28 = arith.constant 0 : index
    %40 = vector.load %arg2[%c0_26, %c0_27, %c0_28] : memref<1x8x32xf32, #tpu.memory_space<vmem>>, vector<1x8x32xf32>
    %41 = vector.shape_cast %40 : vector<1x8x32xf32> to vector<8x32xf32>
    %c0_29 = arith.constant 0 : index
    %c0_30 = arith.constant 0 : index
    %42 = vector.load %arg11[%c0_29, %c0_30] : memref<32x96xf32, #tpu.memory_space<vmem>>, vector<32x96xf32>
    %43 = arith.truncf %41 : vector<8x32xf32> to vector<8x32xbf16>
    %44 = arith.truncf %42 : vector<32x96xf32> to vector<32x96xbf16>
    %cst_31 = arith.constant dense<0.000000e+00> : vector<8x96xf32>
    %45 = tpu.matmul %43, %44, %cst_31 {dimension_numbers = #tpu.dot_dimension_numbers<[1], [0], [0], [1], [0, 0, 1, 1], [], []>} : vector<8x32xbf16>, vector<32x96xbf16>, vector<8x96xf32> -> vector<8x96xf32>
    %c0_32 = arith.constant 0 : index
    %c0_33 = arith.constant 0 : index
    %46 = vector.load %arg12[%c0_32, %c0_33] : memref<1x96xf32, #tpu.memory_space<vmem>>, vector<1x96xf32>
    %47 = vector.broadcast %46 : vector<1x96xf32> to vector<8x96xf32>
    %48 = arith.addf %45, %47 : vector<8x96xf32>
    %49 = vector.extract_strided_slice %48 {offsets = [0, 0], sizes = [8, 32], strides = [1, 1]} : vector<8x96xf32> to vector<8x32xf32>
    %50 = vector.shape_cast %49 : vector<8x32xf32> to vector<8x4x8xf32>
    %51 = tpu.transpose %50, [1, 0, 2] : vector<8x4x8xf32> -> vector<4x8x8xf32>
    %52 = vector.extract_strided_slice %48 {offsets = [0, 32], sizes = [8, 32], strides = [1, 1]} : vector<8x96xf32> to vector<8x32xf32>
    %53 = vector.shape_cast %52 : vector<8x32xf32> to vector<8x4x8xf32>
    %54 = tpu.transpose %53, [1, 0, 2] : vector<8x4x8xf32> -> vector<4x8x8xf32>
    %55 = vector.extract_strided_slice %48 {offsets = [0, 64], sizes = [8, 32], strides = [1, 1]} : vector<8x96xf32> to vector<8x32xf32>
    %56 = vector.shape_cast %55 : vector<8x32xf32> to vector<8x4x8xf32>
    %57 = tpu.transpose %56, [1, 0, 2] : vector<8x4x8xf32> -> vector<4x8x8xf32>
    %58 = arith.truncf %51 : vector<4x8x8xf32> to vector<4x8x8xbf16>
    %59 = arith.truncf %54 : vector<4x8x8xf32> to vector<4x8x8xbf16>
    "tpu.trace_start"() <{level = 10 : i32, message = "hqd,hkd->hqk"}> : () -> ()
    %cst_34 = arith.constant dense<0.000000e+00> : vector<4x8x8xf32>
    %60 = tpu.matmul %58, %59, %cst_34 {dimension_numbers = #tpu.dot_dimension_numbers<[2], [2], [1], [1], [0, 0, 0, 1, 1, 1], [0], [0]>} : vector<4x8x8xbf16>, vector<4x8x8xbf16>, vector<4x8x8xf32> -> vector<4x8x8xf32>
    "tpu.trace_stop"() : () -> ()
    %cst_35 = arith.constant 0.353553385 : f32
    %61 = vector.broadcast %cst_35 : f32 to vector<4x8x8xf32>
    %62 = arith.mulf %60, %61 : vector<4x8x8xf32>
    %63 = vector.shape_cast %3 : vector<1x8xf32> to vector<1x1x8xf32>
    %64 = vector.broadcast %63 : vector<1x1x8xf32> to vector<4x8x8xf32>
    %65 = arith.addf %62, %64 : vector<4x8x8xf32>
    %cst_36 = arith.constant dense<0xFF800000> : vector<4x8xf32>
    %66 = vector.multi_reduction <maximumf>, %65, %cst_36 [2] : vector<4x8x8xf32> to vector<4x8xf32>
    %cst_37 = arith.constant 0xFF800000 : f32
    %67 = vector.broadcast %cst_37 : f32 to vector<4x8xf32>
    %68 = arith.maximumf %67, %66 : vector<4x8xf32>
    %69 = vector.shape_cast %68 : vector<4x8xf32> to vector<4x8x1xf32>
    %70 = vector.broadcast %69 : vector<4x8x1xf32> to vector<4x8x8xf32>
    %71 = arith.subf %65, %70 : vector<4x8x8xf32>
    %72 = math.exp %71 : vector<4x8x8xf32>
    %cst_38 = arith.constant dense<0.000000e+00> : vector<4x8xf32>
    %73 = vector.multi_reduction <add>, %72, %cst_38 [2] : vector<4x8x8xf32> to vector<4x8xf32>
    %74 = vector.shape_cast %73 : vector<4x8xf32> to vector<4x8x1xf32>
    %75 = vector.broadcast %74 : vector<4x8x1xf32> to vector<4x8x8xf32>
    %76 = arith.divf %72, %75 : vector<4x8x8xf32>
    %77 = arith.truncf %76 : vector<4x8x8xf32> to vector<4x8x8xbf16>
    %78 = arith.truncf %57 : vector<4x8x8xf32> to vector<4x8x8xbf16>
    "tpu.trace_start"() <{level = 10 : i32, message = "hqk,hkd->hqd"}> : () -> ()
    %cst_39 = arith.constant dense<0.000000e+00> : vector<4x8x8xf32>
    %79 = tpu.matmul %77, %78, %cst_39 {dimension_numbers = #tpu.dot_dimension_numbers<[2], [1], [1], [2], [0, 0, 0, 1, 1, 2], [0], [0]>} : vector<4x8x8xbf16>, vector<4x8x8xbf16>, vector<4x8x8xf32> -> vector<4x8x8xf32>
    "tpu.trace_stop"() : () -> ()
    %80 = tpu.transpose %79, [1, 0, 2] : vector<4x8x8xf32> -> vector<8x4x8xf32>
    %81 = vector.shape_cast %80 : vector<8x4x8xf32> to vector<8x32xf32>
    %c0_40 = arith.constant 0 : index
    %c0_41 = arith.constant 0 : index
    %82 = vector.load %arg13[%c0_40, %c0_41] : memref<32x32xf32, #tpu.memory_space<vmem>>, vector<32x32xf32>
    %83 = arith.truncf %81 : vector<8x32xf32> to vector<8x32xbf16>
    %84 = arith.truncf %82 : vector<32x32xf32> to vector<32x32xbf16>
    %cst_42 = arith.constant dense<0.000000e+00> : vector<8x32xf32>
    %85 = tpu.matmul %83, %84, %cst_42 {dimension_numbers = #tpu.dot_dimension_numbers<[1], [0], [0], [1], [0, 0, 1, 1], [], []>} : vector<8x32xbf16>, vector<32x32xbf16>, vector<8x32xf32> -> vector<8x32xf32>
    %c0_43 = arith.constant 0 : index
    %c0_44 = arith.constant 0 : index
    %86 = vector.load %arg14[%c0_43, %c0_44] : memref<1x32xf32, #tpu.memory_space<vmem>>, vector<1x32xf32>
    %87 = vector.broadcast %86 : vector<1x32xf32> to vector<8x32xf32>
    %88 = arith.addf %85, %87 : vector<8x32xf32>
    %89 = arith.addf %41, %88 : vector<8x32xf32>
    %cst_45 = arith.constant dense<0.000000e+00> : vector<8xf32>
    %90 = vector.multi_reduction <add>, %89, %cst_45 [1] : vector<8x32xf32> to vector<8xf32>
    %91 = vector.shape_cast %90 : vector<8xf32> to vector<8x1xf32>
    %cst_46 = arith.constant 3.200000e+01 : f32
    %92 = vector.broadcast %cst_46 : f32 to vector<8x1xf32>
    %93 = arith.divf %91, %92 : vector<8x1xf32>
    %94 = vector.broadcast %93 : vector<8x1xf32> to vector<8x32xf32>
    %95 = arith.subf %89, %94 : vector<8x32xf32>
    %96 = arith.mulf %95, %95 : vector<8x32xf32>
    %cst_47 = arith.constant dense<0.000000e+00> : vector<8xf32>
    %97 = vector.multi_reduction <add>, %96, %cst_47 [1] : vector<8x32xf32> to vector<8xf32>
    %98 = vector.shape_cast %97 : vector<8xf32> to vector<8x1xf32>
    %cst_48 = arith.constant 3.200000e+01 : f32
    %99 = vector.broadcast %cst_48 : f32 to vector<8x1xf32>
    %100 = arith.divf %98, %99 : vector<8x1xf32>
    %101 = vector.broadcast %93 : vector<8x1xf32> to vector<8x32xf32>
    %102 = arith.subf %89, %101 : vector<8x32xf32>
    %cst_49 = arith.constant 9.99999974E-6 : f32
    %103 = vector.broadcast %cst_49 : f32 to vector<8x1xf32>
    %104 = arith.addf %100, %103 : vector<8x1xf32>
    %105 = math.rsqrt %104 : vector<8x1xf32>
    %106 = vector.broadcast %105 : vector<8x1xf32> to vector<8x32xf32>
    %107 = arith.mulf %102, %106 : vector<8x32xf32>
    %c0_50 = arith.constant 0 : index
    %c0_51 = arith.constant 0 : index
    %108 = vector.load %arg25[%c0_50, %c0_51] : memref<3x32xf32, #tpu.memory_space<vmem>>, vector<1x32xf32>
    %109 = vector.broadcast %108 : vector<1x32xf32> to vector<8x32xf32>
    %110 = arith.mulf %107, %109 : vector<8x32xf32>
    %c0_52 = arith.constant 0 : index
    %c0_53 = arith.constant 0 : index
    %111 = vector.load %arg26[%c0_52, %c0_53] : memref<3x32xf32, #tpu.memory_space<vmem>>, vector<1x32xf32>
    %112 = vector.broadcast %111 : vector<1x32xf32> to vector<8x32xf32>
    %113 = arith.addf %110, %112 : vector<8x32xf32>
    %c0_54 = arith.constant 0 : index
    %c0_55 = arith.constant 0 : index
    %114 = vector.load %arg15[%c0_54, %c0_55] : memref<32x32xf32, #tpu.memory_space<vmem>>, vector<32x32xf32>
    %115 = arith.truncf %113 : vector<8x32xf32> to vector<8x32xbf16>
    %116 = arith.truncf %114 : vector<32x32xf32> to vector<32x32xbf16>
    %cst_56 = arith.constant dense<0.000000e+00> : vector<8x32xf32>
    %117 = tpu.matmul %115, %116, %cst_56 {dimension_numbers = #tpu.dot_dimension_numbers<[1], [0], [0], [1], [0, 0, 1, 1], [], []>} : vector<8x32xbf16>, vector<32x32xbf16>, vector<8x32xf32> -> vector<8x32xf32>
    %c0_57 = arith.constant 0 : index
    %c0_58 = arith.constant 0 : index
    %118 = vector.load %arg16[%c0_57, %c0_58] : memref<1x32xf32, #tpu.memory_space<vmem>>, vector<1x32xf32>
    %119 = vector.broadcast %118 : vector<1x32xf32> to vector<8x32xf32>
    %120 = arith.addf %117, %119 : vector<8x32xf32>
    %121 = vector.shape_cast %120 : vector<8x32xf32> to vector<8x4x8xf32>
    %122 = tpu.transpose %121, [1, 0, 2] : vector<8x4x8xf32> -> vector<4x8x8xf32>
    %c0_59 = arith.constant 0 : index
    %c0_60 = arith.constant 0 : index
    %123 = vector.load %arg17[%c0_59, %c0_60] : memref<64x32xf32, #tpu.memory_space<vmem>>, vector<64x32xf32>
    %124 = arith.truncf %123 : vector<64x32xf32> to vector<64x32xbf16>
    %125 = arith.truncf %14 : vector<32x256xf32> to vector<32x256xbf16>
    %cst_61 = arith.constant dense<0.000000e+00> : vector<64x256xf32>
    %126 = tpu.matmul %124, %125, %cst_61 {dimension_numbers = #tpu.dot_dimension_numbers<[1], [0], [0], [1], [0, 0, 1, 1], [], []>} : vector<64x32xbf16>, vector<32x256xbf16>, vector<64x256xf32> -> vector<64x256xf32>
    %c0_62 = arith.constant 0 : index
    %c0_63 = arith.constant 0 : index
    %127 = vector.load %arg18[%c0_62, %c0_63] : memref<64x1xf32, #tpu.memory_space<vmem>>, vector<64x1xf32>
    %128 = vector.broadcast %127 : vector<64x1xf32> to vector<64x256xf32>
    %129 = arith.addf %126, %128 : vector<64x256xf32>
    %130 = vector.shape_cast %129 : vector<64x256xf32> to vector<2x4x8x256xf32>
    %131 = arith.truncf %122 : vector<4x8x8xf32> to vector<4x8x8xbf16>
    %132 = vector.extract_strided_slice %130 {offsets = [0, 0, 0, 0], sizes = [1, 4, 8, 256], strides = [1, 1, 1, 1]} : vector<2x4x8x256xf32> to vector<1x4x8x256xf32>
    %133 = vector.shape_cast %132 : vector<1x4x8x256xf32> to vector<4x8x256xf32>
    %134 = arith.truncf %133 : vector<4x8x256xf32> to vector<4x8x256xbf16>
    "tpu.trace_start"() <{level = 10 : i32, message = "hqd,hds->hqs"}> : () -> ()
    %cst_64 = arith.constant dense<0.000000e+00> : vector<4x8x256xf32>
    %135 = tpu.matmul %131, %134, %cst_64 {dimension_numbers = #tpu.dot_dimension_numbers<[2], [1], [1], [2], [0, 0, 0, 1, 1, 2], [0], [0]>} : vector<4x8x8xbf16>, vector<4x8x256xbf16>, vector<4x8x256xf32> -> vector<4x8x256xf32>
    "tpu.trace_stop"() : () -> ()
    %cst_65 = arith.constant 0.353553385 : f32
    %136 = vector.broadcast %cst_65 : f32 to vector<4x8x256xf32>
    %137 = arith.mulf %135, %136 : vector<4x8x256xf32>
    %cst_66 = arith.constant dense<0xFF800000> : vector<4x8xf32>
    %138 = vector.multi_reduction <maximumf>, %137, %cst_66 [2] : vector<4x8x256xf32> to vector<4x8xf32>
    %cst_67 = arith.constant 0xFF800000 : f32
    %139 = vector.broadcast %cst_67 : f32 to vector<4x8xf32>
    %140 = arith.maximumf %139, %138 : vector<4x8xf32>
    %141 = vector.shape_cast %140 : vector<4x8xf32> to vector<4x8x1xf32>
    %142 = vector.broadcast %141 : vector<4x8x1xf32> to vector<4x8x256xf32>
    %143 = arith.subf %137, %142 : vector<4x8x256xf32>
    %144 = math.exp %143 : vector<4x8x256xf32>
    %cst_68 = arith.constant dense<0.000000e+00> : vector<4x8xf32>
    %145 = vector.multi_reduction <add>, %144, %cst_68 [2] : vector<4x8x256xf32> to vector<4x8xf32>
    %146 = vector.shape_cast %145 : vector<4x8xf32> to vector<4x8x1xf32>
    %147 = vector.broadcast %146 : vector<4x8x1xf32> to vector<4x8x256xf32>
    %148 = arith.divf %144, %147 : vector<4x8x256xf32>
    %149 = arith.truncf %148 : vector<4x8x256xf32> to vector<4x8x256xbf16>
    %150 = vector.extract_strided_slice %130 {offsets = [1, 0, 0, 0], sizes = [1, 4, 8, 256], strides = [1, 1, 1, 1]} : vector<2x4x8x256xf32> to vector<1x4x8x256xf32>
    %151 = vector.shape_cast %150 : vector<1x4x8x256xf32> to vector<4x8x256xf32>
    %152 = arith.truncf %151 : vector<4x8x256xf32> to vector<4x8x256xbf16>
    "tpu.trace_start"() <{level = 10 : i32, message = "hqs,hds->hqd"}> : () -> ()
    %cst_69 = arith.constant dense<0.000000e+00> : vector<4x8x8xf32>
    %153 = tpu.matmul %149, %152, %cst_69 {dimension_numbers = #tpu.dot_dimension_numbers<[2], [2], [1], [1], [0, 0, 0, 1, 1, 1], [0], [0]>} : vector<4x8x256xbf16>, vector<4x8x256xbf16>, vector<4x8x8xf32> -> vector<4x8x8xf32>
    "tpu.trace_stop"() : () -> ()
    %154 = tpu.transpose %153, [1, 0, 2] : vector<4x8x8xf32> -> vector<8x4x8xf32>
    %155 = vector.shape_cast %154 : vector<8x4x8xf32> to vector<8x32xf32>
    %c0_70 = arith.constant 0 : index
    %c0_71 = arith.constant 0 : index
    %156 = vector.load %arg19[%c0_70, %c0_71] : memref<32x32xf32, #tpu.memory_space<vmem>>, vector<32x32xf32>
    %157 = arith.truncf %155 : vector<8x32xf32> to vector<8x32xbf16>
    %158 = arith.truncf %156 : vector<32x32xf32> to vector<32x32xbf16>
    %cst_72 = arith.constant dense<0.000000e+00> : vector<8x32xf32>
    %159 = tpu.matmul %157, %158, %cst_72 {dimension_numbers = #tpu.dot_dimension_numbers<[1], [0], [0], [1], [0, 0, 1, 1], [], []>} : vector<8x32xbf16>, vector<32x32xbf16>, vector<8x32xf32> -> vector<8x32xf32>
    %c0_73 = arith.constant 0 : index
    %c0_74 = arith.constant 0 : index
    %160 = vector.load %arg20[%c0_73, %c0_74] : memref<1x32xf32, #tpu.memory_space<vmem>>, vector<1x32xf32>
    %161 = vector.broadcast %160 : vector<1x32xf32> to vector<8x32xf32>
    %162 = arith.addf %159, %161 : vector<8x32xf32>
    %163 = arith.addf %113, %162 : vector<8x32xf32>
    %cst_75 = arith.constant dense<0.000000e+00> : vector<8xf32>
    %164 = vector.multi_reduction <add>, %163, %cst_75 [1] : vector<8x32xf32> to vector<8xf32>
    %165 = vector.shape_cast %164 : vector<8xf32> to vector<8x1xf32>
    %cst_76 = arith.constant 3.200000e+01 : f32
    %166 = vector.broadcast %cst_76 : f32 to vector<8x1xf32>
    %167 = arith.divf %165, %166 : vector<8x1xf32>
    %168 = vector.broadcast %167 : vector<8x1xf32> to vector<8x32xf32>
    %169 = arith.subf %163, %168 : vector<8x32xf32>
    %170 = arith.mulf %169, %169 : vector<8x32xf32>
    %cst_77 = arith.constant dense<0.000000e+00> : vector<8xf32>
    %171 = vector.multi_reduction <add>, %170, %cst_77 [1] : vector<8x32xf32> to vector<8xf32>
    %172 = vector.shape_cast %171 : vector<8xf32> to vector<8x1xf32>
    %cst_78 = arith.constant 3.200000e+01 : f32
    %173 = vector.broadcast %cst_78 : f32 to vector<8x1xf32>
    %174 = arith.divf %172, %173 : vector<8x1xf32>
    %175 = vector.broadcast %167 : vector<8x1xf32> to vector<8x32xf32>
    %176 = arith.subf %163, %175 : vector<8x32xf32>
    %cst_79 = arith.constant 9.99999974E-6 : f32
    %177 = vector.broadcast %cst_79 : f32 to vector<8x1xf32>
    %178 = arith.addf %174, %177 : vector<8x1xf32>
    %179 = math.rsqrt %178 : vector<8x1xf32>
    %180 = vector.broadcast %179 : vector<8x1xf32> to vector<8x32xf32>
    %181 = arith.mulf %176, %180 : vector<8x32xf32>
    %c1 = arith.constant 1 : index
    %c0_80 = arith.constant 0 : index
    %182 = vector.load %arg25[%c1, %c0_80] : memref<3x32xf32, #tpu.memory_space<vmem>>, vector<1x32xf32>
    %183 = vector.broadcast %182 : vector<1x32xf32> to vector<8x32xf32>
    %184 = arith.mulf %181, %183 : vector<8x32xf32>
    %c1_81 = arith.constant 1 : index
    %c0_82 = arith.constant 0 : index
    %185 = vector.load %arg26[%c1_81, %c0_82] : memref<3x32xf32, #tpu.memory_space<vmem>>, vector<1x32xf32>
    %186 = vector.broadcast %185 : vector<1x32xf32> to vector<8x32xf32>
    %187 = arith.addf %184, %186 : vector<8x32xf32>
    %c0_83 = arith.constant 0 : index
    %c0_84 = arith.constant 0 : index
    %188 = vector.load %arg21[%c0_83, %c0_84] : memref<32x64xf32, #tpu.memory_space<vmem>>, vector<32x64xf32>
    %189 = arith.truncf %187 : vector<8x32xf32> to vector<8x32xbf16>
    %190 = arith.truncf %188 : vector<32x64xf32> to vector<32x64xbf16>
    %cst_85 = arith.constant dense<0.000000e+00> : vector<8x64xf32>
    %191 = tpu.matmul %189, %190, %cst_85 {dimension_numbers = #tpu.dot_dimension_numbers<[1], [0], [0], [1], [0, 0, 1, 1], [], []>} : vector<8x32xbf16>, vector<32x64xbf16>, vector<8x64xf32> -> vector<8x64xf32>
    %c0_86 = arith.constant 0 : index
    %c0_87 = arith.constant 0 : index
    %192 = vector.load %arg22[%c0_86, %c0_87] : memref<1x64xf32, #tpu.memory_space<vmem>>, vector<1x64xf32>
    %193 = vector.broadcast %192 : vector<1x64xf32> to vector<8x64xf32>
    %194 = arith.addf %191, %193 : vector<8x64xf32>
    %cst_88 = arith.constant 0.000000e+00 : f32
    %195 = vector.broadcast %cst_88 : f32 to vector<8x64xf32>
    %196 = arith.maximumf %194, %195 : vector<8x64xf32>
    %c0_89 = arith.constant 0 : index
    %c0_90 = arith.constant 0 : index
    %197 = vector.load %arg23[%c0_89, %c0_90] : memref<64x32xf32, #tpu.memory_space<vmem>>, vector<64x32xf32>
    %198 = arith.truncf %196 : vector<8x64xf32> to vector<8x64xbf16>
    %199 = arith.truncf %197 : vector<64x32xf32> to vector<64x32xbf16>
    %cst_91 = arith.constant dense<0.000000e+00> : vector<8x32xf32>
    %200 = tpu.matmul %198, %199, %cst_91 {dimension_numbers = #tpu.dot_dimension_numbers<[1], [0], [0], [1], [0, 0, 1, 1], [], []>} : vector<8x64xbf16>, vector<64x32xbf16>, vector<8x32xf32> -> vector<8x32xf32>
    %201 = arith.addf %187, %200 : vector<8x32xf32>
    %c0_92 = arith.constant 0 : index
    %c0_93 = arith.constant 0 : index
    %202 = vector.load %arg24[%c0_92, %c0_93] : memref<1x32xf32, #tpu.memory_space<vmem>>, vector<1x32xf32>
    %203 = vector.broadcast %202 : vector<1x32xf32> to vector<8x32xf32>
    %204 = arith.addf %201, %203 : vector<8x32xf32>
    %cst_94 = arith.constant dense<0.000000e+00> : vector<8xf32>
    %205 = vector.multi_reduction <add>, %204, %cst_94 [1] : vector<8x32xf32> to vector<8xf32>
    %206 = vector.shape_cast %205 : vector<8xf32> to vector<8x1xf32>
    %cst_95 = arith.constant 3.200000e+01 : f32
    %207 = vector.broadcast %cst_95 : f32 to vector<8x1xf32>
    %208 = arith.divf %206, %207 : vector<8x1xf32>
    %209 = vector.broadcast %208 : vector<8x1xf32> to vector<8x32xf32>
    %210 = arith.subf %204, %209 : vector<8x32xf32>
    %211 = arith.mulf %210, %210 : vector<8x32xf32>
    %cst_96 = arith.constant dense<0.000000e+00> : vector<8xf32>
    %212 = vector.multi_reduction <add>, %211, %cst_96 [1] : vector<8x32xf32> to vector<8xf32>
    %213 = vector.shape_cast %212 : vector<8xf32> to vector<8x1xf32>
    %cst_97 = arith.constant 3.200000e+01 : f32
    %214 = vector.broadcast %cst_97 : f32 to vector<8x1xf32>
    %215 = arith.divf %213, %214 : vector<8x1xf32>
    %216 = vector.broadcast %208 : vector<8x1xf32> to vector<8x32xf32>
    %217 = arith.subf %204, %216 : vector<8x32xf32>
    %cst_98 = arith.constant 9.99999974E-6 : f32
    %218 = vector.broadcast %cst_98 : f32 to vector<8x1xf32>
    %219 = arith.addf %215, %218 : vector<8x1xf32>
    %220 = math.rsqrt %219 : vector<8x1xf32>
    %221 = vector.broadcast %220 : vector<8x1xf32> to vector<8x32xf32>
    %222 = arith.mulf %217, %221 : vector<8x32xf32>
    %c2 = arith.constant 2 : index
    %c0_99 = arith.constant 0 : index
    %223 = vector.load %arg25[%c2, %c0_99] : memref<3x32xf32, #tpu.memory_space<vmem>>, vector<1x32xf32>
    %224 = vector.broadcast %223 : vector<1x32xf32> to vector<8x32xf32>
    %225 = arith.mulf %222, %224 : vector<8x32xf32>
    %c2_100 = arith.constant 2 : index
    %c0_101 = arith.constant 0 : index
    %226 = vector.load %arg26[%c2_100, %c0_101] : memref<3x32xf32, #tpu.memory_space<vmem>>, vector<1x32xf32>
    %227 = vector.broadcast %226 : vector<1x32xf32> to vector<8x32xf32>
    %228 = arith.addf %225, %227 : vector<8x32xf32>
    %c0_102 = arith.constant 0 : index
    %c0_103 = arith.constant 0 : index
    %229 = vector.load %arg27[%c0_102, %c0_103] : memref<32x8xf32, #tpu.memory_space<vmem>>, vector<32x8xf32>
    %230 = arith.truncf %228 : vector<8x32xf32> to vector<8x32xbf16>
    %231 = arith.truncf %229 : vector<32x8xf32> to vector<32x8xbf16>
    %cst_104 = arith.constant dense<0.000000e+00> : vector<8x8xf32>
    %232 = tpu.matmul %230, %231, %cst_104 {dimension_numbers = #tpu.dot_dimension_numbers<[1], [0], [0], [1], [0, 0, 1, 1], [], []>} : vector<8x32xbf16>, vector<32x8xbf16>, vector<8x8xf32> -> vector<8x8xf32>
    %c0_105 = arith.constant 0 : index
    %c0_106 = arith.constant 0 : index
    %233 = vector.load %arg28[%c0_105, %c0_106] : memref<1x8xf32, #tpu.memory_space<vmem>>, vector<1x8xf32>
    %234 = vector.broadcast %233 : vector<1x8xf32> to vector<8x8xf32>
    %235 = arith.addf %232, %234 : vector<8x8xf32>
    %236 = vector.extract_strided_slice %235 {offsets = [0, 0], sizes = [8, 3], strides = [1, 1]} : vector<8x8xf32> to vector<8x3xf32>
    %cst_107 = arith.constant dense<0xFF800000> : vector<8xf32>
    %237 = vector.multi_reduction <maximumf>, %236, %cst_107 [1] : vector<8x3xf32> to vector<8xf32>
    %238 = vector.shape_cast %237 : vector<8xf32> to vector<8x1xf32>
    %239 = vector.broadcast %238 : vector<8x1xf32> to vector<8x3xf32>
    %240 = arith.subf %236, %239 : vector<8x3xf32>
    %241 = math.exp %240 : vector<8x3xf32>
    %cst_108 = arith.constant dense<0.000000e+00> : vector<8xf32>
    %242 = vector.multi_reduction <add>, %241, %cst_108 [1] : vector<8x3xf32> to vector<8xf32>
    %243 = vector.shape_cast %242 : vector<8xf32> to vector<8x1xf32>
    %244 = math.log %243 : vector<8x1xf32>
    %245 = arith.addf %238, %244 : vector<8x1xf32>
    %246 = vector.extract_strided_slice %235 {offsets = [0, 3], sizes = [8, 1], strides = [1, 1]} : vector<8x8xf32> to vector<8x1xf32>
    %247 = vector.extract_strided_slice %2 {offsets = [0, 0], sizes = [8, 1], strides = [1, 1]} : vector<8x2xf32> to vector<8x1xf32>
    %248 = vector.extract_strided_slice %235 {offsets = [0, 4], sizes = [8, 1], strides = [1, 1]} : vector<8x8xf32> to vector<8x1xf32>
    %cst_109 = arith.constant 5.000000e-01 : f32
    %249 = vector.broadcast %cst_109 : f32 to vector<8x1xf32>
    %250 = arith.mulf %249, %248 : vector<8x1xf32>
    %251 = math.exp %250 : vector<8x1xf32>
    %252 = arith.mulf %247, %251 : vector<8x1xf32>
    %253 = arith.addf %246, %252 : vector<8x1xf32>
    %cst_110 = arith.constant 0.000000e+00 : f32
    %254 = vector.broadcast %cst_110 : f32 to vector<8x1xf32>
    %255 = arith.maximumf %253, %254 : vector<8x1xf32>
    %256 = vector.extract_strided_slice %235 {offsets = [0, 5], sizes = [8, 1], strides = [1, 1]} : vector<8x8xf32> to vector<8x1xf32>
    %257 = vector.extract_strided_slice %2 {offsets = [0, 1], sizes = [8, 1], strides = [1, 1]} : vector<8x2xf32> to vector<8x1xf32>
    %258 = vector.extract_strided_slice %235 {offsets = [0, 6], sizes = [8, 1], strides = [1, 1]} : vector<8x8xf32> to vector<8x1xf32>
    %cst_111 = arith.constant 5.000000e-01 : f32
    %259 = vector.broadcast %cst_111 : f32 to vector<8x1xf32>
    %260 = arith.mulf %259, %258 : vector<8x1xf32>
    %261 = math.exp %260 : vector<8x1xf32>
    %262 = arith.mulf %257, %261 : vector<8x1xf32>
    %263 = arith.addf %256, %262 : vector<8x1xf32>
    %cst_112 = arith.constant 0.000000e+00 : f32
    %264 = vector.broadcast %cst_112 : f32 to vector<8x1xf32>
    %265 = arith.maximumf %263, %264 : vector<8x1xf32>
    %266 = vector.broadcast %245 : vector<8x1xf32> to vector<8x3xf32>
    %267 = arith.subf %236, %266 : vector<8x3xf32>
    %cst_113 = arith.constant 0.000000e+00 : f32
    %268 = vector.broadcast %cst_113 : f32 to vector<8x123xf32>
    %269 = tpu.concatenate %267, %255, %265, %268 in 1 : vector<8x3xf32>, vector<8x1xf32>, vector<8x1xf32>, vector<8x123xf32> -> vector<8x128xf32>
    %cst_114 = arith.constant 0.000000e+00 : f32
    %270 = vector.broadcast %cst_114 : f32 to vector<1x124xf32>
    %271 = tpu.concatenate %30, %270 in 1 : vector<1x4xf32>, vector<1x124xf32> -> vector<1x128xf32>
    %cst_115 = arith.constant 0.000000e+00 : f32
    %272 = vector.broadcast %cst_115 : f32 to vector<6x112xf32>
    %273 = tpu.concatenate %39, %272 in 1 : vector<6x16xf32>, vector<6x112xf32> -> vector<6x128xf32>
    %cst_116 = arith.constant 0.000000e+00 : f32
    %274 = vector.broadcast %cst_116 : f32 to vector<1x128xf32>
    %275 = tpu.concatenate %269, %271, %273, %274 in 0 : vector<8x128xf32>, vector<1x128xf32>, vector<6x128xf32>, vector<1x128xf32> -> vector<16x128xf32>
    %c0_117 = arith.constant 0 : index
    %c0_118 = arith.constant 0 : index
    %c0_119 = arith.constant 0 : index
    %276 = vector.load %arg29[%c0_117, %c0_118, %c0_119] : memref<1x16x128xf32, #tpu.memory_space<vmem>>, vector<1x16x128xf32>
    %277 = vector.shape_cast %276 : vector<1x16x128xf32> to vector<16x128xf32>
    %278 = vector.shape_cast %275 : vector<16x128xf32> to vector<1x16x128xf32>
    tpu.vector_store %arg29[%c0_117, %c0_118, %c0_119], %278 {strides = array<i32>} : memref<1x16x128xf32, #tpu.memory_space<vmem>>, vector<1x16x128xf32>,
    return
  }
  func.func @transform_0(%arg0: i32) -> (i32, i32, i32) {
    %c0_i32 = arith.constant 0 : i32
    %c0_i32_0 = arith.constant 0 : i32
    %c0_i32_1 = arith.constant 0 : i32
    return %arg0, %c0_i32, %c0_i32_0 : i32, i32, i32
  }
  func.func @transform_1(%arg0: i32) -> (i32, i32, i32) {
    %c0_i32 = arith.constant 0 : i32
    %c0_i32_0 = arith.constant 0 : i32
    %c0_i32_1 = arith.constant 0 : i32
    return %arg0, %c0_i32, %c0_i32_0 : i32, i32, i32
  }
  func.func @transform_2(%arg0: i32) -> (i32, i32, i32) {
    %c0_i32 = arith.constant 0 : i32
    %c0_i32_0 = arith.constant 0 : i32
    %c0_i32_1 = arith.constant 0 : i32
    return %arg0, %c0_i32, %c0_i32_0 : i32, i32, i32
  }
  func.func @transform_3(%arg0: i32) -> (i32, i32, i32) {
    %c0_i32 = arith.constant 0 : i32
    %c0_i32_0 = arith.constant 0 : i32
    %c0_i32_1 = arith.constant 0 : i32
    return %arg0, %c0_i32, %c0_i32_0 : i32, i32, i32
  }
  func.func @transform_4(%arg0: i32) -> (i32, i32) {
    %c0_i32 = arith.constant 0 : i32
    %c0_i32_0 = arith.constant 0 : i32
    %c0_i32_1 = arith.constant 0 : i32
    return %c0_i32, %c0_i32_0 : i32, i32
  }
  func.func @transform_5(%arg0: i32) -> (i32, i32) {
    %c0_i32 = arith.constant 0 : i32
    %c0_i32_0 = arith.constant 0 : i32
    %c0_i32_1 = arith.constant 0 : i32
    return %c0_i32, %c0_i32_0 : i32, i32
  }
  func.func @transform_6(%arg0: i32) -> (i32, i32) {
    %c0_i32 = arith.constant 0 : i32
    %c0_i32_0 = arith.constant 0 : i32
    %c0_i32_1 = arith.constant 0 : i32
    return %c0_i32, %c0_i32_0 : i32, i32
  }
  func.func @transform_7(%arg0: i32) -> (i32, i32) {
    %c0_i32 = arith.constant 0 : i32
    %c0_i32_0 = arith.constant 0 : i32
    %c0_i32_1 = arith.constant 0 : i32
    return %c0_i32, %c0_i32_0 : i32, i32
  }
  func.func @transform_8(%arg0: i32) -> (i32, i32) {
    %c0_i32 = arith.constant 0 : i32
    %c0_i32_0 = arith.constant 0 : i32
    %c0_i32_1 = arith.constant 0 : i32
    return %c0_i32, %c0_i32_0 : i32, i32
  }
  func.func @transform_9(%arg0: i32) -> (i32, i32) {
    %c0_i32 = arith.constant 0 : i32
    %c0_i32_0 = arith.constant 0 : i32
    %c0_i32_1 = arith.constant 0 : i32
    return %c0_i32, %c0_i32_0 : i32, i32
  }
  func.func @transform_10(%arg0: i32) -> (i32, i32) {
    %c0_i32 = arith.constant 0 : i32
    %c0_i32_0 = arith.constant 0 : i32
    %c0_i32_1 = arith.constant 0 : i32
    return %c0_i32, %c0_i32_0 : i32, i32
  }
  func.func @transform_11(%arg0: i32) -> (i32, i32) {
    %c0_i32 = arith.constant 0 : i32
    %c0_i32_0 = arith.constant 0 : i32
    %c0_i32_1 = arith.constant 0 : i32
    return %c0_i32, %c0_i32_0 : i32, i32
  }
  func.func @transform_12(%arg0: i32) -> (i32, i32) {
    %c0_i32 = arith.constant 0 : i32
    %c0_i32_0 = arith.constant 0 : i32
    %c0_i32_1 = arith.constant 0 : i32
    return %c0_i32, %c0_i32_0 : i32, i32
  }
  func.func @transform_13(%arg0: i32) -> (i32, i32) {
    %c0_i32 = arith.constant 0 : i32
    %c0_i32_0 = arith.constant 0 : i32
    %c0_i32_1 = arith.constant 0 : i32
    return %c0_i32, %c0_i32_0 : i32, i32
  }
  func.func @transform_14(%arg0: i32) -> (i32, i32) {
    %c0_i32 = arith.constant 0 : i32
    %c0_i32_0 = arith.constant 0 : i32
    %c0_i32_1 = arith.constant 0 : i32
    return %c0_i32, %c0_i32_0 : i32, i32
  }
  func.func @transform_15(%arg0: i32) -> (i32, i32) {
    %c0_i32 = arith.constant 0 : i32
    %c0_i32_0 = arith.constant 0 : i32
    %c0_i32_1 = arith.constant 0 : i32
    return %c0_i32, %c0_i32_0 : i32, i32
  }
  func.func @transform_16(%arg0: i32) -> (i32, i32) {
    %c0_i32 = arith.constant 0 : i32
    %c0_i32_0 = arith.constant 0 : i32
    %c0_i32_1 = arith.constant 0 : i32
    return %c0_i32, %c0_i32_0 : i32, i32
  }
  func.func @transform_17(%arg0: i32) -> (i32, i32) {
    %c0_i32 = arith.constant 0 : i32
    %c0_i32_0 = arith.constant 0 : i32
    %c0_i32_1 = arith.constant 0 : i32
    return %c0_i32, %c0_i32_0 : i32, i32
  }
  func.func @transform_18(%arg0: i32) -> (i32, i32) {
    %c0_i32 = arith.constant 0 : i32
    %c0_i32_0 = arith.constant 0 : i32
    %c0_i32_1 = arith.constant 0 : i32
    return %c0_i32, %c0_i32_0 : i32, i32
  }
  func.func @transform_19(%arg0: i32) -> (i32, i32) {
    %c0_i32 = arith.constant 0 : i32
    %c0_i32_0 = arith.constant 0 : i32
    %c0_i32_1 = arith.constant 0 : i32
    return %c0_i32, %c0_i32_0 : i32, i32
  }
  func.func @transform_20(%arg0: i32) -> (i32, i32) {
    %c0_i32 = arith.constant 0 : i32
    %c0_i32_0 = arith.constant 0 : i32
    %c0_i32_1 = arith.constant 0 : i32
    return %c0_i32, %c0_i32_0 : i32, i32
  }
  func.func @transform_21(%arg0: i32) -> (i32, i32) {
    %c0_i32 = arith.constant 0 : i32
    %c0_i32_0 = arith.constant 0 : i32
    %c0_i32_1 = arith.constant 0 : i32
    return %c0_i32, %c0_i32_0 : i32, i32
  }
  func.func @transform_22(%arg0: i32) -> (i32, i32) {
    %c0_i32 = arith.constant 0 : i32
    %c0_i32_0 = arith.constant 0 : i32
    %c0_i32_1 = arith.constant 0 : i32
    return %c0_i32, %c0_i32_0 : i32, i32
  }
  func.func @transform_23(%arg0: i32) -> (i32, i32) {
    %c0_i32 = arith.constant 0 : i32
    %c0_i32_0 = arith.constant 0 : i32
    %c0_i32_1 = arith.constant 0 : i32
    return %c0_i32, %c0_i32_0 : i32, i32
  }
  func.func @transform_24(%arg0: i32) -> (i32, i32) {
    %c0_i32 = arith.constant 0 : i32
    %c0_i32_0 = arith.constant 0 : i32
    %c0_i32_1 = arith.constant 0 : i32
    return %c0_i32, %c0_i32_0 : i32, i32
  }
  func.func @transform_25(%arg0: i32) -> (i32, i32) {
    %c0_i32 = arith.constant 0 : i32
    %c0_i32_0 = arith.constant 0 : i32
    %c0_i32_1 = arith.constant 0 : i32
    return %c0_i32, %c0_i32_0 : i32, i32
  }
  func.func @transform_26(%arg0: i32) -> (i32, i32) {
    %c0_i32 = arith.constant 0 : i32
    %c0_i32_0 = arith.constant 0 : i32
    %c0_i32_1 = arith.constant 0 : i32
    return %c0_i32, %c0_i32_0 : i32, i32
  }
  func.func @transform_27(%arg0: i32) -> (i32, i32) {
    %c0_i32 = arith.constant 0 : i32
    %c0_i32_0 = arith.constant 0 : i32
    %c0_i32_1 = arith.constant 0 : i32
    return %c0_i32, %c0_i32_0 : i32, i32
  }
  func.func @transform_28(%arg0: i32) -> (i32, i32, i32) {
    %c0_i32 = arith.constant 0 : i32
    %c0_i32_0 = arith.constant 0 : i32
    %c0_i32_1 = arith.constant 0 : i32
    return %arg0, %c0_i32, %c0_i32_0 : i32, i32, i32
  }
}

</mosaic_0001>

<bundles_post_ra>
// kernel: refgaze_forward.1
= control target key start
LH: loop header
LB: loop body
LE: loop exit
PB: predicated region body
PF: predicated region fallthrough
CT: control target
= control target key end

     0   :  { %s4837_s0 = inlined_call_operand.vmem [shape: f32[2,4,256], index: 0, kind: input, shape index: {}]   ;;  %s4838_s1 = inlined_call_operand.vmem [shape: f32[2,8,32], index: 1, kind: input, shape index: {}]   ;;  %s4839_s2 = inlined_call_operand.vmem [shape: f32[2,6,32], index: 2, kind: input, shape index: {}]   ;;  %s4840_s3 = inlined_call_operand.vmem [shape: f32[2,9,8], index: 3, kind: input, shape index: {}]   ;;  %s4841_s4 = inlined_call_operand.vmem [shape: f32[32,4], index: 4, kind: input, shape index: {}]   ;;  %s4842_s5 = inlined_call_operand.vmem [shape: f32[32,1], index: 5, kind: input, shape index: {}]   ;;  %s4843_s6 = inlined_call_operand.vmem [shape: f32[32,4], index: 6, kind: input, shape index: {}]   ;;  %s4844_s7 = inlined_call_operand.vmem [shape: f32[1,4], index: 7, kind: input, shape index: {}]   ;;  %s4845_s8 = inlined_call_operand.vmem [shape: f32[32,16], index: 8, kind: input, shape index: {}]   ;;  %s4846_s9 = inlined_call_operand.vmem [shape: f32[1,16], index: 9, kind: input, shape index: {}]   ;;  %s4847_s10 = inlined_call_operand.vmem [shape: f32[32,96], index: 10, kind: input, shape index: {}]   ;;  %s4848_s11 = inlined_call_operand.vmem [shape: f32[1,96], index: 11, kind: input, shape index: {}]   ;;  %s4849_s12 = inlined_call_operand.vmem [shape: f32[32,32], index: 12, kind: input, shape index: {}]   ;;  %s4850_s13 = inlined_call_operand.vmem [shape: f32[1,32], index: 13, kind: input, shape index: {}]   ;;  %s4851_s14 = inlined_call_operand.vmem [shape: f32[32,32], index: 14, kind: input, shape index: {}]   ;;  %s4852_s15 = inlined_call_operand.vmem [shape: f32[1,32], index: 15, kind: input, shape index: {}]   ;;  %s4853_s16 = inlined_call_operand.vmem [shape: f32[64,32], index: 16, kind: input, shape index: {}]   ;;  %s4854_s17 = inlined_call_operand.vmem [shape: f32[64,1], index: 17, kind: input, shape index: {}]   ;;  %s4855_s18 = inlined_call_operand.vmem [shape: f32[32,32], index: 18, kind: input, shape index: {}]   ;;  %s4856_s19 = inlined_call_operand.vmem [shape: f32[1,32], index: 19, kind: input, shape index: {}]   ;;  %s4857_s20 = inlined_call_operand.vmem [shape: f32[32,64], index: 20, kind: input, shape index: {}]   ;;  %s4858_s21 = inlined_call_operand.vmem [shape: f32[1,64], index: 21, kind: input, shape index: {}]   ;;  %s4859_s22 = inlined_call_operand.vmem [shape: f32[64,32], index: 22, kind: input, shape index: {}]   ;;  %s4860_s23 = inlined_call_operand.vmem [shape: f32[1,32], index: 23, kind: input, shape index: {}]   ;;  %s4861_s24 = inlined_call_operand.vmem [shape: f32[3,32], index: 24, kind: input, shape index: {}]   ;;  %s4862_s25 = inlined_call_operand.vmem [shape: f32[3,32], index: 25, kind: input, shape index: {}]   ;;  %s4863_s26 = inlined_call_operand.vmem [shape: f32[32,8], index: 26, kind: input, shape index: {}]   ;;  %s4864_s27 = inlined_call_operand.vmem [shape: f32[1,8], index: 27, kind: input, shape index: {}]   ;;  %s4865_s28 = inlined_call_operand.vmem [shape: f32[2,16,128], index: 28, kind: output, shape index: {}]  }
   0x1   :  { %4882 = sst [smem:[#allocation3_spill]] %s4837_s0 }
   0x2   :  { %4883 = sst [smem:[#allocation4_spill]] %s4838_s1 }
   0x3   :  { %4884 = sst [smem:[#allocation5_spill]] %s4839_s2 }
   0x4   :  { %4885 = sst [smem:[#allocation6_spill]] %s4840_s3 }
   0x5   :  { %4886 = sst [smem:[#allocation7_spill]] %s4841_s4 }
   0x6   :  { %4887 = sst [smem:[#allocation8_spill]] %s4842_s5 }
   0x7   :  { %4888 = sst [smem:[#allocation9_spill]] %s4843_s6 }
   0x8   :  { %4889 = sst [smem:[#allocation10_spill]] %s4844_s7 }
   0x9   :  { %4890 = sst [smem:[#allocation11_spill]] %s4845_s8  ;;  %s4185_s8 = smov 0  }
   0xa   :  { %4891 = sst [smem:[#allocation12_spill]] %s4846_s9 }
   0xb   :  { %4892 = sst [smem:[#allocation13_spill]] %s4847_s10 }
   0xc   :  { %4893 = sst [smem:[#allocation14_spill]] %s4848_s11 }
   0xd   :  { %4894 = sst [smem:[#allocation15_spill]] %s4849_s12 }
   0xe LB: > { %4895 = sst [smem:[#allocation2_spill]] %s4020_s8  ;;  %s3694_s5 = sadd.s32 4294967295, %s4020_s8   ;;  %s4020_s8 = sphi %s4185_s8, %s38_s8  }
   0xf   : > { %p3698_p0 = scmp.ge.s32.totalorder %s4020_s8, 1  ;;  %p790_p1 = scmp.lt.s32.totalorder %s4020_s8, 3 }
  0x11   : > { %p791_p2 = pnand %p3698_p0, %p790_p1 }
  0x12   : > { %s4896_s3 = sld [smem:[#allocation11_spill]] (!%p791_p2)  ;;  %p877_p3 = scmp.lt.s32.totalorder (!%p791_p2), %s3694_s5, 1 }
  0x13   : > { %794 = sbr.rel (%p791_p2) target bundleno = 4895 (0x131f), region = 132  ;;  %s4897_s4 = sld [smem:[#allocation13_spill]] (!%p791_p2) }
  0x14   : > { %s4898_s0 = sld [smem:[#allocation5_spill]] (!%p791_p2)  ;;  %s4874_s10 = smov (!%p791_p2), 104  }
  0x15   : > { %s4900_s6 = sld [smem:[#allocation14_spill]] (!%p791_p2)  ;;  %s4879_s29 = smov (!%p791_p2), 112  }
  0x16   : > { %s4901_s1 = sld [smem:[#allocation3_spill]] (!%p791_p2) }
  0x17   : > { %s4903_s30 = sld [smem:[#allocation6_spill]] (!%p791_p2) }
  0x18   : > { %v1063_v0 = vld [vmem:[%s4896_s3 + $0x10] sm:$0xff]  ;;  %v1064_v1 = vld [vmem:[%s4896_s3 + $0x18] sm:$0xff]  ;;  %v1061_v2 = vld [vmem:[%s4896_s3] sm:$0xff]  ;;  %v4022_v3 = vmov 0.0   ;;  %vm4023_vm0 = vmmov 0   ;;  %s4918_s5 = smov (!%p877_p3, %s3694_s5), 1  ;;  %v1192_v44 = vlaneseq }
  0x19   : > { %3813 = vmatprep.subr.bf16.mxu1 %v4022_v3  ;;  %v1067_v4 = vpack.c.bf16 %v1064_v1, %v1063_v0  ;;  %v1062_v5 = vld [vmem:[%s4896_s3 + $0x8] sm:$0xff]  ;;  %3817 = vmatprep.mubr.msk.bf16.mxu1 %vm4023_vm0, %v4022_v3  ;;  %s4212_s7 = sshll.u32 %s4918_s5, 3  ;;  %v1122_v7 = vld [vmem:[%s4897_s4 + $0x10] sm:$0xff]  ;;  %v1123_v8 = vld [vmem:[%s4897_s4 + $0x18] sm:$0xff]  ;;  %vm1075_vm1 = vcmask 261120   ;;  %s4899_s3 = sld [smem:[#allocation4_spill]] }
  0x1a   : > { %v1066_v6 = vpack.c.bf16 %v1062_v5, %v1061_v2  ;;  %s889_s11 = scalar_lea.vmem %s4898_s0, %s4212_s7  ;;  %v1126_v11 = vpack.c.bf16 %v1123_v8, %v1122_v7  ;;  %v1120_v12 = vld [vmem:[%s4897_s4] sm:$0xff]  ;;  %v1121_v13 = vld [vmem:[%s4897_s4 + $0x8] sm:$0xff]  ;;  %s4880_s0 = smov 120   ;;  %vm946_vm2 = vcmask 1041408   ;;  %v4028_v35 = vmov 0  }
  0x1b   : > { %3814 = vmatpush3.bf16.msra.mxu1 %v1067_v4  ;;  %v1060_v9 = vld [vmem:[%s889_s11] sm:$0x3f]  ;;  %v1125_v15 = vpack.c.bf16 %v1121_v13, %v1120_v12  ;;  %s4026_s11 = smov 96   ;;  %985 = vmatprep.mubr.bf16.mxu0 %v4028_v35  ;;  %vm939_vm3 = vcmask 31744   ;;  %v4029_v42 = vmov 1983009808  }
  0x1c   : > { %3815 = vmatprep.subr.bf16.mxu1 %v4022_v3  ;;  %v1065_v10 = vpack.c.bf16 %v1060_v9, %v1060_v9  ;;  %v3713_v21 = vld [vmem:[%s4900_s6] ss:$0 sm:$0xff]  ;;  %s881_s9 = scalar_lea.vmem %s4901_s1, %s4212_s7  ;;  %3955 = vset.pattern.permute.xlu0 %v4028_v35  ;;  %v1190_v43 = vunpack.c.l.s4 %v4029_v42  ;;  %v1193_v46 = vshrl.u32 %v1192_v44, 7  ;;  %v4030_v47 = vmov 1934713408   ;;  %s4031_s6 = smov 64  }
  0x1d   : > { %v907_v27 = vld [vmem:[%s881_s9] sm:$0xff]  ;;  %3956 = vset.pattern.permute.xlu1 %v4028_v35  ;;  %v1222_v48 = vunpack.c.l.s4 %v4030_v47  ;;  %vm1627_vm4 = vcmask 64512   ;;  %vm1879_vm5 = vcmask 1043456   ;;  %s4904_s2 = sld [smem:[#allocation15_spill]]  ;;  %s4876_s1 = smov 24   ;;  %vm2212_vm6 = vcmask 195584  }
  0x1e   : > { %v911_v28 = vcombine.high %v907_v27, %v907_v27  ;;  %v913_v30 = vpack.c.bf16 %v907_v27, %v907_v27  ;;  %v1191_v45 = vunpack.c.0.s8 %v1190_v43  ;;  %vm2210_vm7 = vcmask 130048  }
  0x1f   : > { %3816 = vmatpush3.bf16.msra.mxu1 %v1066_v6  ;;  %s885_s12 = scalar_lea.vmem %s4899_s3, %s4212_s7  ;;  %s4902_s3 = sld [smem:[#allocation7_spill]]  ;;  %v1223_v54 = vunpack.c.0.s8 %v1222_v48  ;;  %vm3411_vm8 = vcmask 523264   ;;  %vm3546_vm9 = vcmask 23552   ;;  %vm3597_vm10 = vcmask 1040384  }
  0x20   : > { %3821 = vmatprep.subr.bf16.mxu1 %v4022_v3  ;;  %v4236_v14 = vld [vmem:[%s885_s12] sm:$0xff]  ;;  %v914_v29 = vpack.c.bf16 %v911_v28, %v911_v28  ;;  %v948_v31 = vsel %vm946_vm2, %v913_v30, 0  ;;  %v4303_v51 = vsub.s32 %v1191_v45, %v1193_v46  ;;  %s4877_s12 = smov 8   ;;  %s4911_s7 = smov 24   ;;  %vm3599_vm11 = vcmask 1046528  }
  0x21   : > { %v1124_v16 = vpack.c.bf16 %v4236_v14, %v4236_v14  ;;  %v4313_v61 = vsub.s32 %v1223_v54, %v1193_v46  ;;  %vm3590_vm12 = vcmask 39936  }
  0x22   : > { %3818 = vmatmul.mubr.msk.bf16.vlgmr.msra.gmra.mxu1 %vm1075_vm1, %v1065_v10  ;;  %3707 = vmatprep.subr.msk.bf16.mxu0 %vm946_vm2, %v914_v29 }
  0x23   : > { %3822 = vmatpush3.bf16.msra.mxu1 %v1126_v11  ;;  %3825 = vmatprep.mubr.msk.bf16.mxu1 %vm4023_vm0, %v4022_v3 }
  0x24   : > { %3823 = vmatprep.subr.bf16.mxu1 %v4022_v3  ;;  %968 = vmatpush1.bf16.msra.mxu0 %v948_v31 }
  0x25   : > { %v903_v32 = vld [vmem:[%s4902_s3] sm:$0xff]  ;;  %v904_v33 = vld [vmem:[%s4902_s3 + $0x8] sm:$0xff]  ;;  %3829 = vmatprep.subr.bf16.mxu0 %v4022_v3  ;;  %v905_v37 = vld [vmem:[%s4902_s3 + $0x10] sm:$0xff] }
  0x26   : > { %v908_v34 = vpack.c.bf16 %v904_v33, %v903_v32  ;;  %v906_v38 = vld [vmem:[%s4902_s3 + $0x18] sm:$0xff] }
  0x27   : > { %3824 = vmatpush3.bf16.msra.mxu1 %v1125_v15  ;;  %v909_v39 = vpack.c.bf16 %v906_v38, %v905_v37 }
  0x28   : > { %3835 = vmatprep.subr.bf16.mxu1 %v4022_v3  ;;  %3708 = vmatmul.mubr.msk.bf16.vlgmr.msra.gmra.mxu0 %vm939_vm3, %v908_v34 }
  0x29   : > { %995 = vmatprep.mubr.bf16.mxu0 %v4028_v35 }
  0x2a   : > { %3826 = vmatmul.mubr.msk.bf16.vlgmr.msra.gmra.mxu1 %vm1075_vm1, %v1124_v16 }
  0x2b   : > { %3837 = vmatprep.mubr.msk.bf16.mxu1 %vm4023_vm0, %v4022_v3 }
  0x30   : > { %3709 = vmatmul.mubr.msk.bf16.gmra.mxu0 %vm939_vm3, %v909_v39 }
  0x31   : > { %3831 = vmatprep.mubr.msk.bf16.mxu0 %vm4023_vm0, %v4022_v3 }
  0xe2   : > { %v4247_v17 = vpop.f32.mrf.mxu1 }
  0xe4   : > { %v3819_v18 = vpop.f32.mrf.mxu1 }
  0xe6   : > { %v1116_v19 = vpop.f32.mrf.mxu1 }
  0xe8   : > { %v3820_v20 = vpop.f32.mrf.mxu1 }
  0xea   : > { %v1171_v22 = vpop.f32.mrf.mxu1 }
  0xeb   : > { %v4252_v23 = vadd.f32 %v3713_v21, %v1171_v22 }
  0xec   : > { %v3827_v24 = vpop.f32.mrf.mxu1 }
  0xed   : > { %1184 = vrot.lane.b32.xlu1 %v4252_v23, %s4874_s10  ;;  %1178 = vrot.lane.b32.xlu0 %v4252_v23, %s4880_s0  ;;  %s4878_s10 = smov 16   ;;  %s4037_s0 = smov 4  }
  0xee   : > { %v1174_v25 = vpop.f32.mrf.mxu1 }
  0xf0   : > { %v3828_v26 = vpop.f32.mrf.mxu1 }
  0xf1   : > { %1323 = vrot.lane.b32.xlu1 %v4252_v23, %s4026_s11  ;;  %1181 = vrot.lane.b32.xlu0 %v4252_v23, %s4879_s29 }
 0x15f   : > { %v4278_v36 = vpop.permute.xlu0 %1178  ;;  %v4288_v40 = vpop.permute.xlu1 %1184 }
 0x160   : > { %1325 = vrot.lane.b32.xlu0 %v4278_v36, %s4026_s11  ;;  %v1203_v52 = vcombine.low %v4278_v36, %v4288_v40  ;;  %v1204_v53 = vcombine.high %v4278_v36, %v4288_v40 }
 0x162   : > { %v1211_v57 = vrot.slane %v1203_v52, %v4303_v51  ;;  %v1218_v58 = vrot.slane %v1204_v53, %v4303_v51 }
 0x163   : > { %v4290_v41 = vpop.permute.xlu0 %1181  ;;  %v1324_v59 = vpop.permute.xlu1 %1323 }
 0x164   : > { %1329 = vrot.lane.b32.xlu0 %v4288_v40, %s4026_s11  ;;  %1327 = vrot.lane.b32.xlu1 %v4290_v41, %s4026_s11  ;;  %v1187_v49 = vcombine.low %v4252_v23, %v4290_v41  ;;  %v1188_v50 = vcombine.high %v4252_v23, %v4290_v41  ;;  %s4875_s11 = sshll.u32 %s4918_s5, 4 }
 0x165   : > { %s4383_s8 = scalar_lea.vmem %s4903_s30, %s4875_s11  ;;  %s4905_s11 = sld [smem:[#allocation8_spill]] }
 0x166   : > { %v1195_v55 = vrot.slane %v1187_v49, %v4303_v51  ;;  %v1202_v56 = vrot.slane %v1188_v50, %v4303_v51  ;;  %s4914_s30 = sld [smem:[#allocation12_spill]] }
 0x168   : > { %v1219_v62 = vcombine.low %v1195_v55, %v1211_v57  ;;  %v1220_v63 = vcombine.high %v1195_v55, %v1211_v57  ;;  %v1235_v0 = vcombine.low %v1202_v56, %v1218_v58  ;;  %v1236_v1 = vcombine.high %v1202_v56, %v1218_v58 }
 0x16a   : > { %v1227_v9 = vrot.slane %v1219_v62, %v4313_v61  ;;  %v1234_v10 = vrot.slane %v1220_v63, %v4313_v61  ;;  %v1243_v11 = vrot.slane %v1235_v0, %v4313_v61  ;;  %v1250_v12 = vrot.slane %v1236_v1, %v4313_v61 }
 0x16c   : > { %v1255_v24 = vcombine.low %v1227_v9, %v1234_v10  ;;  %v3715_v25 = vcombine.high %v1227_v9, %v1234_v10  ;;  %v1271_v26 = vcombine.low %v1243_v11, %v1250_v12  ;;  %v3716_v27 = vcombine.high %v1243_v11, %v1250_v12 }
 0x16e   : > { %v1262_v38 = vrot.slane %v1255_v24, %v4303_v51  ;;  %v1270_v39 = vrot.slane %v3715_v25, %v4303_v51  ;;  %v1278_v42 = vrot.slane %v1271_v26, %v4303_v51  ;;  %v1286_v43 = vrot.slane %v3716_v27, %v4303_v51  ;;  %v4363_v26 = vpop.f32.mrf.mxu0 }
 0x170   : > { %v1287_v53 = vcombine.low %v1262_v38, %v1270_v39  ;;  %v1303_v54 = vcombine.low %v1278_v42, %v1286_v43  ;;  %v1304_v10 = vcombine.high %v1278_v42, %v1286_v43  ;;  %v4365_v27 = vpop.f32.mrf.mxu0 }
 0x172   : > { %v1295_v62 = vrot.slane %v1287_v53, %v4313_v61  ;;  %v1311_v63 = vrot.slane %v1303_v54, %v4313_v61 }
 0x174   : > { %v1320_v9 = vcombine.high %v1295_v62, %v1311_v63 }
 0x1d2   : > { %v1326_v60 = vpop.permute.xlu0 %1325 }
 0x1d6   : > { %v1328_v2 = vpop.permute.xlu1 %1327  ;;  %v1330_v4 = vpop.permute.xlu0 %1329 }
 0x1d7   : > { %v1335_v5 = vcombine.low %v1324_v59, %v1328_v2  ;;  %v1336_v6 = vcombine.high %v1324_v59, %v1328_v2  ;;  %v1351_v7 = vcombine.low %v1326_v60, %v1330_v4  ;;  %v1352_v8 = vcombine.high %v1326_v60, %v1330_v4 }
 0x1d9   : > { %v1343_v13 = vrot.slane %v1335_v5, %v4303_v51  ;;  %v1350_v15 = vrot.slane %v1336_v6, %v4303_v51  ;;  %v1359_v16 = vrot.slane %v1351_v7, %v4303_v51  ;;  %v1366_v18 = vrot.slane %v1352_v8, %v4303_v51 }
 0x1da   : > { %v1288_v7 = vcombine.high %v1262_v38, %v1270_v39  ;;  %v1319_v8 = vcombine.low %v1295_v62, %v1311_v63  ;;  %v3725_v38 = vld [vmem:[%s4383_s8 + $0x8] ss:$0 sm:$0xff] }
 0x1db   : > { %v1367_v19 = vcombine.low %v1343_v13, %v1359_v16  ;;  %v1368_v20 = vcombine.high %v1343_v13, %v1359_v16  ;;  %v1383_v21 = vcombine.low %v1350_v15, %v1366_v18  ;;  %v1384_v22 = vcombine.high %v1350_v15, %v1366_v18 }
 0x1dc   : > { %v1619_v13 = vpack.c.bf16 %v1319_v8, %v1319_v8  ;;  %v1620_v15 = vpack.c.bf16 %v1320_v9, %v1320_v9  ;;  %v1302_v16 = vrot.slane %v1288_v7, %v4313_v61  ;;  %v1318_v18 = vrot.slane %v1304_v10, %v4313_v61 }
 0x1dd   : > { %v1375_v28 = vrot.slane %v1367_v19, %v4313_v61  ;;  %v1382_v29 = vrot.slane %v1368_v20, %v4313_v61  ;;  %v1391_v30 = vrot.slane %v1383_v21, %v4313_v61  ;;  %v1398_v31 = vrot.slane %v1384_v22, %v4313_v61 }
 0x1de   : > { %v1321_v21 = vcombine.low %v1302_v16, %v1318_v18  ;;  %v1322_v22 = vcombine.high %v1302_v16, %v1318_v18 }
 0x1df   : > { %v1403_v32 = vcombine.low %v1375_v28, %v1382_v29  ;;  %v3717_v33 = vcombine.high %v1375_v28, %v1382_v29  ;;  %v1419_v34 = vcombine.low %v1391_v30, %v1398_v31  ;;  %v3718_v37 = vcombine.high %v1391_v30, %v1398_v31  ;;  %v4367_v28 = vpop.f32.mrf.mxu0 }
 0x1e0   : > { %v1621_v24 = vpack.c.bf16 %v1321_v21, %v1321_v21  ;;  %v1622_v25 = vpack.c.bf16 %v1322_v22, %v1322_v22 }
 0x1e1   : > { %v1410_v44 = vrot.slane %v1403_v32, %v4303_v51  ;;  %v1418_v45 = vrot.slane %v3717_v33, %v4303_v51  ;;  %v1426_v46 = vrot.slane %v1419_v34, %v4303_v51  ;;  %v1434_v47 = vrot.slane %v3718_v37, %v4303_v51  ;;  %v4369_v29 = vpop.f32.mrf.mxu0 }
 0x1e3   : > { %v1435_v48 = vcombine.low %v1410_v44, %v1418_v45  ;;  %v1451_v49 = vcombine.low %v1426_v46, %v1434_v47  ;;  %v1436_v50 = vcombine.high %v1410_v44, %v1418_v45  ;;  %v1452_v52 = vcombine.high %v1426_v46, %v1434_v47  ;;  %v4371_v30 = vpop.f32.mrf.mxu0 }
 0x1e5   : > { %v1443_v55 = vrot.slane %v1435_v48, %v4313_v61  ;;  %v1459_v56 = vrot.slane %v1451_v49, %v4313_v61  ;;  %v1450_v59 = vrot.slane %v1436_v50, %v4313_v61  ;;  %v1466_v60 = vrot.slane %v1452_v52, %v4313_v61  ;;  %v4373_v31 = vpop.f32.mrf.mxu0 }
 0x1e7   : > { %v1467_v57 = vcombine.low %v1443_v55, %v1459_v56  ;;  %v1468_v58 = vcombine.high %v1443_v55, %v1459_v56  ;;  %v1469_v5 = vcombine.low %v1450_v59, %v1466_v60  ;;  %v1470_v6 = vcombine.high %v1450_v59, %v1466_v60  ;;  %v4375_v32 = vpop.f32.mrf.mxu0 }
 0x1e9   : > { %v1623_v0 = vpack.c.bf16 %v1467_v57, %v1467_v57  ;;  %v1624_v1 = vpack.c.bf16 %v1468_v58, %v1468_v58  ;;  %v1625_v11 = vpack.c.bf16 %v1469_v5, %v1469_v5  ;;  %v1626_v12 = vpack.c.bf16 %v1470_v6, %v1470_v6  ;;  %v4385_v33 = vpop.f32.mrf.mxu0 }
 0x1eb   : > { %v1632_v2 = vsel %vm1627_vm4, %v1623_v0, 0  ;;  %v1678_v4 = vsel %vm1627_vm4, %v1624_v1, 0  ;;  %v1724_v19 = vsel %vm1627_vm4, %v1625_v11, 0  ;;  %v1770_v20 = vsel %vm1627_vm4, %v1626_v12, 0 }
 0x1ec   : > { %3830 = vmatpush3.bf16.xpose.msra.mxu0 %v1632_v2  ;;  %3836 = vmatpush3.bf16.xpose.msra.mxu1 %v1678_v4 }
 0x1ed   : > { %3841 = vmatprep.subr.bf16.mxu0 %v4022_v3  ;;  %3847 = vmatprep.subr.bf16.mxu1 %v4022_v3 }
 0x1f3   : > { %3832 = vmatmul.mubr.msk.bf16.vlgmr.msra.gmra.mxu0 %vm1627_vm4, %v1619_v13  ;;  %3838 = vmatmul.mubr.msk.bf16.vlgmr.msra.gmra.mxu1 %vm1627_vm4, %v1620_v15 }
 0x1f4   : > { %3842 = vmatpush3.bf16.xpose.msra.mxu0 %v1724_v19  ;;  %3848 = vmatpush3.bf16.xpose.msra.mxu1 %v1770_v20 }
 0x1f5   : > { %3843 = vmatprep.mubr.msk.bf16.mxu0 %vm4023_vm0, %v4022_v3  ;;  %3849 = vmatprep.mubr.msk.bf16.mxu1 %vm4023_vm0, %v4022_v3 }
 0x1f6   : > { %3853 = vmatprep.subr.bf16.mxu0 %v4022_v3  ;;  %3859 = vmatprep.subr.bf16.mxu1 %v4022_v3 }
 0x1fb   : > { %3844 = vmatmul.mubr.msk.bf16.vlgmr.msra.gmra.mxu0 %vm1627_vm4, %v1621_v24  ;;  %3850 = vmatmul.mubr.msk.bf16.vlgmr.msra.gmra.mxu1 %vm1627_vm4, %v1622_v25 }
 0x1fc   : > { %3855 = vmatprep.mubr.msk.bf16.mxu0 %vm4023_vm0, %v4022_v3  ;;  %3861 = vmatprep.mubr.msk.bf16.mxu1 %vm4023_vm0, %v4022_v3 }
 0x2b3   : > { %v1668_v34 = vpop.f32.mrf.mxu0  ;;  %v1714_v37 = vpop.f32.mrf.mxu1 }
 0x2b4   : > { %v1812_v39 = vmul.f32 0.35355338, %v1668_v34  ;;  %v1813_v42 = vmul.f32 0.35355338, %v1714_v37 }
 0x2b5   : > { %v3833_v43 = vpop.f32.mrf.mxu0  ;;  %v3839_v44 = vpop.f32.mrf.mxu1 }
 0x2b6   : > { %v1821_v45 = vadd.f32 %v3725_v38, %v1813_v42  ;;  %v1820_v46 = vadd.f32 %v3725_v38, %v1812_v39 }
 0x2b7   : > { %v1671_v47 = vpop.f32.mrf.mxu0  ;;  %v1717_v48 = vpop.f32.mrf.mxu1 }
 0x2b8   : > { %v1827_v49 = vsel %vm1627_vm4, %v1821_v45, -inf  ;;  %v1824_v50 = vsel %vm1627_vm4, %v1820_v46, -inf }
 0x2b9   : > { %1828 = vmax.xlane.f32.xlu0 %v1827_v49  ;;  %v3840_v52 = vpop.f32.mrf.mxu1  ;;  %1825 = vmax.xlane.f32.xlu1 %v1824_v50  ;;  %v3834_v53 = vpop.f32.mrf.mxu0 }
 0x2bb   : > { %v1760_v54 = vpop.f32.mrf.mxu0  ;;  %v1806_v55 = vpop.f32.mrf.mxu1 }
 0x2bc   : > { %v1814_v56 = vmul.f32 0.35355338, %v1760_v54  ;;  %v1815_v57 = vmul.f32 0.35355338, %v1806_v55 }
 0x2bd   : > { %v3845_v58 = vpop.f32.mrf.mxu0  ;;  %v3851_v59 = vpop.f32.mrf.mxu1 }
 0x2be   : > { %v1823_v60 = vadd.f32 %v3725_v38, %v1815_v57  ;;  %v1822_v62 = vadd.f32 %v3725_v38, %v1814_v56 }
 0x2bf   : > { %v1763_v63 = vpop.f32.mrf.mxu0  ;;  %v1809_v0 = vpop.f32.mrf.mxu1 }
 0x2c0   : > { %v1833_v1 = vsel %vm1627_vm4, %v1823_v60, -inf  ;;  %v1830_v2 = vsel %vm1627_vm4, %v1822_v62, -inf }
 0x2c1   : > { %v3852_v4 = vpop.f32.mrf.mxu1  ;;  %1834 = vmax.xlane.f32.xlu1 %v1833_v1  ;;  %1831 = vmax.xlane.f32.xlu0 %v1830_v2  ;;  %v3846_v5 = vpop.f32.mrf.mxu0 }
 0x2d2   : > { %1473 = vrot.lane.b32.xlu1 %v4278_v36, %s4031_s6 }
 0x2d7   : > { %1471 = vrot.lane.b32.xlu0 %v4252_v23, %s4031_s6 }
 0x342   : > { %v1829_v6 = vpop.xlane.xlu0 %1828  ;;  %v1826_v7 = vpop.xlane.xlu1 %1825 }
 0x343   : > { %v1837_v8 = vsub.f32 %v1821_v45, %v1829_v6  ;;  %v1836_v9 = vsub.f32 %v1820_v46, %v1826_v7 }
 0x345   : > { %v1842_v10 = vmul.f32 1.442695, %v1837_v8  ;;  %v1840_v11 = vmul.f32 1.442695, %v1836_v9 }
 0x347   : > { %3958 = vpow2.f32 %v1842_v10 }
 0x348   : > { %3960 = vpow2.f32 %v1840_v11 }
 0x34a   : > { %v1832_v23 = vpop.xlane.xlu0 %1831  ;;  %v1835_v16 = vpop.xlane.xlu1 %1834 }
 0x34b   : > { %v1838_v18 = vsub.f32 %v1822_v62, %v1832_v23  ;;  %v1839_v19 = vsub.f32 %v1823_v60, %v1835_v16 }
 0x34d   : > { %v1844_v20 = vmul.f32 1.442695, %v1838_v18  ;;  %v1846_v21 = vmul.f32 1.442695, %v1839_v19 }
 0x34e   : > { %v1472_v34 = vpop.permute.xlu0 %1471 }
 0x34f   : > { %3962 = vpow2.f32 %v1844_v20 }
 0x350   : > { %3964 = vpow2.f32 %v1846_v21 }
 0x354   : > { %v4394_v12 = vpop.eup %3958 }
 0x355   : > { %v4396_v13 = vpop.eup %3960  ;;  %v1851_v15 = vsel %vm1627_vm4, %v4394_v12, 0.0 }
 0x356   : > { %1852 = vadd.xlane.f32.xlu1 %v1851_v15  ;;  %v1848_v36 = vsel %vm1627_vm4, %v4396_v13, 0.0 }
 0x357   : > { %1849 = vadd.xlane.f32.xlu0 %v1848_v36 }
 0x35c   : > { %v4404_v22 = vpop.eup %3962 }
 0x35d   : > { %v4406_v24 = vpop.eup %3964  ;;  %v1854_v25 = vsel %vm1627_vm4, %v4404_v22, 0.0 }
 0x367   : > { %1475 = vrot.lane.b32.xlu1 %v4290_v41, %s4031_s6  ;;  %v1857_v41 = vsel %vm1627_vm4, %v4406_v24, 0.0 }
 0x36d   : > { %1477 = vrot.lane.b32.xlu0 %v4288_v40, %s4031_s6  ;;  %v1474_v40 = vpop.permute.xlu1 %1473  ;;  %s4908_s6 = smov 104  }
 0x38b   : > { %1855 = vadd.xlane.f32.xlu1 %v1854_v25 }
 0x38c   : > { %1858 = vadd.xlane.f32.xlu0 %v1857_v41 }
 0x3df   : > { %v1853_v37 = vpop.xlane.xlu1 %1852 }
 0x3e0   : > { %v1850_v38 = vpop.xlane.xlu0 %1849  ;;  %3966 = vrcp.f32 %v1853_v37 }
 0x3e1   : > { %3968 = vrcp.f32 %v1850_v38 }
 0x3e3   : > { %v1476_v39 = vpop.permute.xlu1 %1475 }
 0x3e4   : > { %v1483_v42 = vcombine.low %v1472_v34, %v1476_v39  ;;  %v1484_v43 = vcombine.high %v1472_v34, %v1476_v39  ;;  %v1478_v44 = vpop.permute.xlu0 %1477 }
 0x3e5   : > { %v1499_v45 = vcombine.low %v1474_v40, %v1478_v44  ;;  %v1500_v46 = vcombine.high %v1474_v40, %v1478_v44 }
 0x3e6   : > { %v1491_v47 = vrot.slane %v1483_v42, %v4303_v51  ;;  %v1498_v48 = vrot.slane %v1484_v43, %v4303_v51 }
 0x3e7   : > { %v1507_v49 = vrot.slane %v1499_v45, %v4303_v51  ;;  %v1514_v50 = vrot.slane %v1500_v46, %v4303_v51 }
 0x3e9   : > { %v1515_v52 = vcombine.low %v1491_v47, %v1507_v49  ;;  %v1516_v53 = vcombine.high %v1491_v47, %v1507_v49  ;;  %v1531_v54 = vcombine.low %v1498_v48, %v1514_v50  ;;  %v1532_v55 = vcombine.high %v1498_v48, %v1514_v50 }
 0x3eb   : > { %v1523_v56 = vrot.slane %v1515_v52, %v4313_v61  ;;  %v1530_v57 = vrot.slane %v1516_v53, %v4313_v61  ;;  %v1539_v58 = vrot.slane %v1531_v54, %v4313_v61  ;;  %v1546_v59 = vrot.slane %v1532_v55, %v4313_v61 }
 0x3ed   : > { %v1551_v60 = vcombine.low %v1523_v56, %v1530_v57  ;;  %v3719_v62 = vcombine.high %v1523_v56, %v1530_v57  ;;  %v1567_v63 = vcombine.low %v1539_v58, %v1546_v59  ;;  %v3720_v0 = vcombine.high %v1539_v58, %v1546_v59  ;;  %v3967_v10 = vpop.eup %3966 }
 0x3ee   : > { %v3969_v16 = vpop.eup %3968  ;;  %v1863_v34 = vmul.f32 %v3967_v10, %v4394_v12 }
 0x3ef   : > { %v1558_v1 = vrot.slane %v1551_v60, %v4303_v51  ;;  %v1566_v2 = vrot.slane %v3719_v62, %v4303_v51  ;;  %v1574_v4 = vrot.slane %v1567_v63, %v4303_v51  ;;  %v1582_v5 = vrot.slane %v3720_v0, %v4303_v51 }
 0x3f0   : > { %v1861_v40 = vmul.f32 %v3969_v16, %v4396_v13  ;;  %v1869_v44 = vpack.c.bf16 %v1863_v34, %v1863_v34 }
 0x3f1   : > { %v1583_v6 = vcombine.low %v1558_v1, %v1566_v2  ;;  %v1599_v7 = vcombine.low %v1574_v4, %v1582_v5  ;;  %v1584_v8 = vcombine.high %v1558_v1, %v1566_v2  ;;  %v1600_v9 = vcombine.high %v1574_v4, %v1582_v5 }
 0x3f2   : > { %v1868_v43 = vpack.c.bf16 %v1861_v40, %v1861_v40 }
 0x3f3   : > { %v1591_v11 = vrot.slane %v1583_v6, %v4313_v61  ;;  %v1607_v15 = vrot.slane %v1599_v7, %v4313_v61  ;;  %v1598_v36 = vrot.slane %v1584_v8, %v4313_v61  ;;  %v1614_v23 = vrot.slane %v1600_v9, %v4313_v61 }
 0x3f5   : > { %v1615_v18 = vcombine.low %v1591_v11, %v1607_v15  ;;  %v1616_v19 = vcombine.high %v1591_v11, %v1607_v15  ;;  %v1617_v20 = vcombine.low %v1598_v36, %v1614_v23  ;;  %v1618_v21 = vcombine.high %v1598_v36, %v1614_v23  ;;  %v2216_v15 = vld [vmem:[%s4904_s2 + $0x10] sm:$0xff]  ;;  %v2217_v36 = vld [vmem:[%s4904_s2 + $0x18] sm:$0xff] }
 0x3f7   : > { %v1872_v25 = vpack.c.bf16 %v1615_v18, %v1615_v18  ;;  %v1873_v41 = vpack.c.bf16 %v1616_v19, %v1616_v19  ;;  %v1874_v39 = vpack.c.bf16 %v1617_v20, %v1617_v20  ;;  %v1875_v42 = vpack.c.bf16 %v1618_v21, %v1618_v21 }
 0x3f9   : > { %v1881_v37 = vsel %vm1879_vm5, %v1872_v25, 0  ;;  %v1927_v38 = vsel %vm1879_vm5, %v1873_v41, 0  ;;  %v1973_v12 = vsel %vm1879_vm5, %v1874_v39, 0  ;;  %v2019_v13 = vsel %vm1879_vm5, %v1875_v42, 0  ;;  %v2215_v39 = vld [vmem:[%s4904_s2 + $0x8] sm:$0xff] }
 0x3fa   : > { %3854 = vmatpush3.bf16.msra.mxu0 %v1881_v37  ;;  %3860 = vmatpush3.bf16.msra.mxu1 %v1927_v38  ;;  %v2220_v25 = vpack.c.bf16 %v2217_v36, %v2216_v15  ;;  %v2214_v38 = vld [vmem:[%s4904_s2] sm:$0xff]  ;;  %v917_v36 = vld [vmem:[%s4905_s11 + $0x10] sm:$0xff]  ;;  %s4913_s2 = sld [smem:[#allocation10_spill]] }
 0x3fb   : > { %3865 = vmatprep.subr.bf16.mxu0 %v4022_v3  ;;  %3871 = vmatprep.subr.bf16.mxu1 %v4022_v3 }
 0x3fd   : > { %3856 = vmatmul.mubr.msk.bf16.vlgmr.msra.gmra.mxu0 %vm1627_vm4, %v1868_v43  ;;  %3862 = vmatmul.mubr.msk.bf16.vlgmr.msra.gmra.mxu1 %vm1627_vm4, %v1869_v44 }
 0x3fe   : > { %3866 = vmatpush3.bf16.msra.mxu0 %v1973_v12  ;;  %3872 = vmatpush3.bf16.msra.mxu1 %v2019_v13  ;;  %v2219_v13 = vpack.c.bf16 %v2215_v39, %v2214_v38  ;;  %v2298_v38 = vld [vmem:[%s4851_s14] sm:$0xff]  ;;  %v2299_v39 = vld [vmem:[%s4851_s14 + $0x8] sm:$0xff] }
 0x3ff   : > { %3867 = vmatprep.mubr.msk.bf16.mxu0 %vm4023_vm0, %v4022_v3  ;;  %3873 = vmatprep.mubr.msk.bf16.mxu1 %vm4023_vm0, %v4022_v3 }
 0x400   : > { %3877 = vmatprep.subr.bf16.mxu0 %v4022_v3  ;;  %3885 = vmatprep.subr.bf16.mxu1 %v4022_v3 }
 0x414   : > { %v1856_v45 = vpop.xlane.xlu1 %1855 }
 0x415   : > { %3970 = vrcp.f32 %v1856_v45  ;;  %v1859_v46 = vpop.xlane.xlu0 %1858 }
 0x416   : > { %3972 = vrcp.f32 %v1859_v46 }
 0x422   : > { %v3971_v47 = vpop.eup %3970 }
 0x423   : > { %v3973_v48 = vpop.eup %3972  ;;  %v1865_v49 = vmul.f32 %v3971_v47, %v4404_v22 }
 0x424   : > { %v1867_v50 = vmul.f32 %v3973_v48, %v4406_v24 }
 0x425   : > { %v1870_v52 = vpack.c.bf16 %v1865_v49, %v1865_v49 }
 0x426   : > { %v1871_v53 = vpack.c.bf16 %v1867_v50, %v1867_v50 }
 0x427   : > { %3868 = vmatmul.mubr.msk.bf16.vlgmr.msra.gmra.mxu0 %vm1627_vm4, %v1870_v52 }
 0x428   : > { %3874 = vmatmul.mubr.msk.bf16.vlgmr.msra.gmra.mxu1 %vm1627_vm4, %v1871_v53  ;;  %3881 = vmatprep.mubr.msk.bf16.mxu0 %vm4023_vm0, %v4022_v3 }
 0x429   : > { %3889 = vmatprep.mubr.msk.bf16.mxu1 %vm4023_vm0, %v4022_v3  ;;  %3878 = vmatpush3.bf16.msra.mxu0 %v2220_v25  ;;  %v916_v25 = vld [vmem:[%s4905_s11 + $0x8] sm:$0xff] }
 0x42a   : > { %3879 = vmatprep.subr.bf16.mxu0 %v4022_v3 }
 0x42d   : > { %3880 = vmatpush3.bf16.msra.mxu0 %v2219_v13 }
 0x4bd   : > { %v1917_v54 = vpop.f32.mrf.mxu0  ;;  %v1963_v55 = vpop.f32.mrf.mxu1 }
 0x4bf   : > { %v3857_v56 = vpop.f32.mrf.mxu0  ;;  %v3863_v57 = vpop.f32.mrf.mxu1 }
 0x4c1   : > { %v1920_v58 = vpop.f32.mrf.mxu0  ;;  %v1966_v22 = vpop.f32.mrf.mxu1 }
 0x4c3   : > { %v3858_v59 = vpop.f32.mrf.mxu0  ;;  %v3864_v24 = vpop.f32.mrf.mxu1 }
 0x4e7   : > { %v2009_v60 = vpop.f32.mrf.mxu0 }
 0x4e8   : > { %v2061_v62 = vcombine.low %v1917_v54, %v2009_v60  ;;  %v2062_v63 = vcombine.high %v1917_v54, %v2009_v60  ;;  %v2055_v0 = vpop.f32.mrf.mxu1 }
 0x4e9   : > { %v2077_v1 = vcombine.low %v1963_v55, %v2055_v0  ;;  %v2078_v2 = vcombine.high %v1963_v55, %v2055_v0  ;;  %v3869_v4 = vpop.f32.mrf.mxu0 }
 0x4ea   : > { %v2069_v5 = vrot.slane %v2061_v62, %v4303_v51  ;;  %v2076_v6 = vrot.slane %v2062_v63, %v4303_v51  ;;  %v3875_v7 = vpop.f32.mrf.mxu1 }
 0x4eb   : > { %v2085_v8 = vrot.slane %v2077_v1, %v4303_v51  ;;  %v2092_v9 = vrot.slane %v2078_v2, %v4303_v51  ;;  %v2012_v10 = vpop.f32.mrf.mxu0 }
 0x4ec   : > { %v2058_v11 = vpop.f32.mrf.mxu1 }
 0x4ed   : > { %v2093_v23 = vcombine.low %v2069_v5, %v2085_v8  ;;  %v2094_v16 = vcombine.high %v2069_v5, %v2085_v8  ;;  %v2109_v18 = vcombine.low %v2076_v6, %v2092_v9  ;;  %v2110_v19 = vcombine.high %v2076_v6, %v2092_v9  ;;  %v3870_v20 = vpop.f32.mrf.mxu0  ;;  %v3732_v5 = vld [vmem:[%s4850_s13] ss:$0 sm:$0xff] }
 0x4ee   : > { %v3876_v21 = vpop.f32.mrf.mxu1 }
 0x4ef   : > { %v2101_v41 = vrot.slane %v2093_v23, %v4313_v61  ;;  %v2108_v40 = vrot.slane %v2094_v16, %v4313_v61  ;;  %v2117_v34 = vrot.slane %v2109_v18, %v4313_v61  ;;  %v2124_v37 = vrot.slane %v2110_v19, %v4313_v61  ;;  %v915_v21 = vld [vmem:[%s4905_s11] sm:$0xff] }
 0x4f1   : > { %v2129_v42 = vcombine.low %v2101_v41, %v2108_v40  ;;  %v3730_v43 = vcombine.high %v2101_v41, %v2108_v40  ;;  %v2145_v44 = vcombine.low %v2117_v34, %v2124_v37  ;;  %v3731_v12 = vcombine.high %v2117_v34, %v2124_v37  ;;  %v2300_v41 = vld [vmem:[%s4851_s14 + $0x10] sm:$0xff]  ;;  %v2301_v40 = vld [vmem:[%s4851_s14 + $0x18] sm:$0xff]  ;;  %v2518_v37 = vld [vmem:[%s4854_s17 + $0x8] sm:$0xff] }
 0x4f2   : > { %v2304_v34 = vpack.c.bf16 %v2301_v40, %v2300_v41  ;;  %v2505_v41 = vld [vmem:[%s4853_s16 + $0x20] sm:$0xff]  ;;  %v2506_v40 = vld [vmem:[%s4853_s16 + $0x28] sm:$0xff] }
 0x4f3   : > { %v2136_v45 = vrot.slane %v2129_v42, %v4303_v51  ;;  %v2144_v46 = vrot.slane %v3730_v43, %v4303_v51  ;;  %v2152_v47 = vrot.slane %v2145_v44, %v4303_v51  ;;  %v2160_v48 = vrot.slane %v3731_v12, %v4303_v51  ;;  %v2520_v43 = vld [vmem:[%s4854_s17 + $0x18] sm:$0xff] }
 0x4f4   : > { %3886 = vmatpush3.bf16.msra.mxu1 %v2304_v34  ;;  %v2303_v42 = vpack.c.bf16 %v2299_v39, %v2298_v38  ;;  %v2511_v34 = vpack.c.bf16 %v2506_v40, %v2505_v41 }
 0x4f5   : > { %v2162_v49 = vcombine.high %v2136_v45, %v2144_v46  ;;  %v2178_v50 = vcombine.high %v2152_v47, %v2160_v48  ;;  %v2161_v52 = vcombine.low %v2136_v45, %v2144_v46  ;;  %v2177_v53 = vcombine.low %v2152_v47, %v2160_v48  ;;  %3887 = vmatprep.subr.bf16.mxu1 %v4022_v3 }
 0x4f7   : > { %v2176_v54 = vrot.slane %v2162_v49, %v4313_v61  ;;  %v2192_v55 = vrot.slane %v2178_v50, %v4313_v61  ;;  %v2169_v56 = vrot.slane %v2161_v52, %v4313_v61  ;;  %v2185_v57 = vrot.slane %v2177_v53, %v4313_v61 }
 0x4f8   : > { %3888 = vmatpush3.bf16.msra.mxu1 %v2303_v42 }
 0x4f9   : > { %v2195_v58 = vcombine.low %v2176_v54, %v2192_v55  ;;  %v2194_v22 = vcombine.high %v2169_v56, %v2185_v57  ;;  %v2193_v59 = vcombine.low %v2169_v56, %v2185_v57  ;;  %v2196_v24 = vcombine.high %v2176_v54, %v2192_v55 }
 0x4fb   : > { %2202 = vrot.lane.b32.xlu1 %v2195_v58, %s4878_s10  ;;  %2198 = vrot.lane.b32.xlu0 %v2194_v22, %s4877_s12  ;;  %s4906_s12 = smov 120   ;;  %s4912_s10 = sld [smem:[#allocation9_spill]] }
 0x4ff   : > { %2206 = vrot.lane.b32.xlu1 %v2196_v24, %s4876_s1  ;;  %s4907_s1 = smov 112  }
 0x56d   : > { %v2203_v60 = vpop.permute.xlu1 %2202  ;;  %v2199_v62 = vpop.permute.xlu0 %2198 }
 0x56e   : > { %v2209_v63 = vsel %vm1627_vm4, %v2193_v59, %v2199_v62 }
 0x56f   : > { %v2211_v1 = vsel %vm2210_vm7, %v2209_v63, %v2203_v60 }
 0x571   : > { %v2207_v0 = vpop.permute.xlu1 %2206 }
 0x572   : > { %v2213_v2 = vsel %vm2212_vm6, %v2211_v1, %v2207_v0  ;;  %v2502_v0 = vld [vmem:[%s4853_s16 + $0x8] sm:$0xff] }
 0x573   : > { %v2218_v4 = vpack.c.bf16 %v2213_v2, %v2213_v2 }
 0x575   : > { %3882 = vmatmul.mubr.msk.bf16.vlgmr.msra.gmra.mxu0 %vm1075_vm1, %v2218_v4 }
 0x576   : > { %2609 = vmatprep.mubr.bf16.mxu0 %v4028_v35 }
 0x635   : > { %v2265_v6 = vpop.f32.mrf.mxu0 }
 0x636   : > { %v2266_v7 = vadd.f32 %v3732_v5, %v2265_v6 }
 0x637   : > { %v3883_v8 = vpop.f32.mrf.mxu0 }
 0x638   : > { %v2271_v9 = vadd.f32 %v2266_v7, %v4236_v14  ;;  %v918_v14 = vld [vmem:[%s4905_s11 + $0x18] sm:$0xff]  ;;  %v3735_v7 = vld [vmem:[%s4862_s25] ss:$0 sm:$0xff] }
 0x639   : > { %v2268_v10 = vpop.f32.mrf.mxu0 }
 0x63a   : > { %v2272_v11 = vsel %vm1075_vm1, %v2271_v9, 0.0  ;;  %v2503_v10 = vld [vmem:[%s4853_s16 + $0x10] sm:$0xff] }
 0x63b   : > { %2273 = vadd.xlane.f32.xlu0 %v2272_v11  ;;  %v3884_v15 = vpop.f32.mrf.mxu0  ;;  %v2504_v11 = vld [vmem:[%s4853_s16 + $0x18] sm:$0xff] }
 0x651   : > { %931 = vperm.xlu0 %3955, %v917_v36   ;;  %v2510_v36 = vpack.c.bf16 %v2504_v11, %v2503_v10 }
 0x655   : > { %2532 = vperm.xlu0 %3955, %v2518_v37  }
 0x659   : > { %2542 = vperm.xlu0 %3955, %v2520_v43  }
 0x6c4   : > { %v2274_v23 = vpop.xlane.xlu0 %2273 }
 0x6c5   : > { %v2276_v16 = vmul.f32 0.03125, %v2274_v23  ;;  %v3736_v23 = vld [vmem:[%s4852_s15] ss:$0 sm:$0xff] }
 0x6c7   : > { %v2277_v18 = vsub.f32 %v2271_v9, %v2276_v16 }
 0x6c9   : > { %v2278_v19 = vmul.f32 %v2277_v18, %v2277_v18 }
 0x6cb   : > { %v2279_v20 = vsel %vm1075_vm1, %v2278_v19, 0.0 }
 0x6cc   : > { %2280 = vadd.xlane.f32.xlu1 %v2279_v20  ;;  %v932_v44 = vpop.permute.xlu0 %931 }
 0x6cd   : > { %v4527_v45 = vadd.f32 %v4371_v30, %v932_v44  ;;  %v4530_v46 = vadd.f32 %v4373_v31, %v932_v44 }
 0x6cf   : > { %v1010_v52 = vmax.f32 %v4527_v45, 0.0  ;;  %v1011_v53 = vmax.f32 %v4530_v46, 0.0 }
 0x6dd   : > { %936 = vperm.xlu1 %3956, %v918_v14  }
 0x6e1   : > { %921 = vperm.xlu1 %3956, %v915_v21   ;;  %v2517_v21 = vld [vmem:[%s4854_s17] sm:$0xff] }
 0x6e5   : > { %926 = vperm.xlu1 %3956, %v916_v25   ;;  %v2519_v25 = vld [vmem:[%s4854_s17 + $0x10] sm:$0xff] }
 0x755   : > { %v2281_v12 = vpop.xlane.xlu1 %2280 }
 0x756   : > { %v2282_v13 = vmul.f32 0.03125, %v2281_v12 }
 0x758   : > { %v2283_v47 = vadd.f32 1e-05, %v2282_v13 }
 0x759   : > { %v937_v48 = vpop.permute.xlu1 %936 }
 0x75a   : > { %3974 = vrsqrt.f32 %v2283_v47  ;;  %v1002_v49 = vadd.f32 %v4375_v32, %v937_v48  ;;  %v1004_v50 = vadd.f32 %v4385_v33, %v937_v48 }
 0x75c   : > { %v1012_v54 = vmax.f32 %v1002_v49, 0.0  ;;  %v1013_v55 = vmax.f32 %v1004_v50, 0.0 }
 0x75d   : > { %v922_v56 = vpop.permute.xlu1 %921 }
 0x75e   : > { %v2515_v30 = vpack.c.bf16 %v1012_v54, %v1010_v52  ;;  %v988_v31 = vadd.f32 %v4363_v26, %v922_v56  ;;  %v990_v57 = vadd.f32 %v4365_v27, %v922_v56  ;;  %v2516_v58 = vpack.c.bf16 %v1013_v55, %v1011_v53  ;;  %v2501_v27 = vld [vmem:[%s4853_s16] sm:$0xff] }
 0x75f   : > { %v4542_v32 = vadd.f32 %v1013_v55, %v1012_v54  ;;  %v2509_v6 = vpack.c.bf16 %v2502_v0, %v2501_v27 }
 0x760   : > { %v1006_v33 = vmax.f32 %v988_v31, 0.0  ;;  %v1007_v22 = vmax.f32 %v990_v57, 0.0  ;;  %2589 = vmatprep.subr.bf16.mxu0 %v2516_v58 }
 0x761   : > { %v927_v59 = vpop.permute.xlu1 %926  ;;  %2590 = vmatpush1.bf16.msra.mxu0 %v2515_v30 }
 0x762   : > { %v992_v24 = vadd.f32 %v4367_v28, %v927_v59  ;;  %v994_v60 = vadd.f32 %v4369_v29, %v927_v59  ;;  %v4546_v62 = vadd.f32 %v1007_v22, %v1006_v33  ;;  %v3734_v28 = vld [vmem:[%s4861_s24] ss:$0 sm:$0xff] }
 0x764   : > { %v1008_v63 = vmax.f32 %v992_v24, 0.0  ;;  %v1009_v26 = vmax.f32 %v994_v60, 0.0 }
 0x766   : > { %v2513_v1 = vpack.c.bf16 %v1008_v63, %v1006_v33  ;;  %v2514_v2 = vpack.c.bf16 %v1009_v26, %v1007_v22  ;;  %v4554_v4 = vadd.f32 %v1009_v26, %v1008_v63 }
 0x767   : > { %v3975_v5 = vpop.eup %3974 }
 0x768   : > { %v2285_v29 = vmul.f32 %v3975_v5, %v2277_v18  ;;  %2591 = vmatprep.subr.bf16.mxu0 %v2514_v2 }
 0x769   : > { %2592 = vmatpush1.bf16.msra.mxu0 %v2513_v1 }
 0x76a   : > { %v2291_v8 = vmul.f32 %v3734_v28, %v2285_v29  ;;  %v2533_v29 = vpop.permute.xlu0 %2532 }
 0x76c   : > { %3740 = vmatmul.mubr.msk.bf16.vlgmr.msra.gmra.mxu0 %vm1075_vm1, %v2509_v6  ;;  %v4563_v9 = vadd.f32 %v3735_v7, %v2291_v8 }
 0x76d   : > { %2619 = vmatprep.mubr.bf16.mxu0 %v4028_v35 }
 0x76e   : > { %v2302_v15 = vpack.c.bf16 %v4563_v9, %v4563_v9 }
 0x770   : > { %3890 = vmatmul.mubr.msk.bf16.vlgmr.msra.gmra.mxu1 %vm1075_vm1, %v2302_v15 }
 0x771   : > { %2703 = vmatprep.mubr.bf16.mxu1 %v4028_v35 }
 0x774   : > { %3741 = vmatmul.mubr.msk.bf16.gmra.mxu0 %vm1075_vm1, %v2510_v36 }
 0x775   : > { %2629 = vmatprep.mubr.bf16.mxu0 %v4028_v35 }
 0x77c   : > { %3742 = vmatmul.mubr.msk.bf16.gmra.mxu0 %vm1075_vm1, %v2511_v34 }
 0x77d   : > { %2639 = vmatprep.mubr.bf16.mxu0 %v4028_v35 }
 0x82c   : > { %v2611_v38 = vpop.f32.mrf.mxu0 }
 0x82e   : > { %v2613_v42 = vpop.f32.mrf.mxu0 }
 0x830   : > { %v2349_v16 = vpop.f32.mrf.mxu1  ;;  %v2615_v48 = vpop.f32.mrf.mxu0 }
 0x831   : > { %v2350_v18 = vadd.f32 %v3736_v23, %v2349_v16  ;;  %v2616_v10 = vadd.f32 %v2615_v48, %v2533_v29  ;;  %v2543_v48 = vpop.permute.xlu0 %2542 }
 0x832   : > { %v3891_v19 = vpop.f32.mrf.mxu1  ;;  %v2617_v58 = vpop.f32.mrf.mxu0 }
 0x833   : > { %2356 = vrot.lane.b32.xlu1 %v2350_v18, %s4906_s12  ;;  %v2618_v11 = vadd.f32 %v2617_v58, %v2533_v29  ;;  %s4915_s12 = sshll.u32 %s4918_s5, 4 }
 0x834   : > { %v2352_v20 = vpop.f32.mrf.mxu1  ;;  %v2621_v0 = vpop.f32.mrf.mxu0 }
 0x835   : > { %v2657_v41 = vpack.c.bf16 %v2618_v11, %v2618_v11 }
 0x836   : > { %v3892_v14 = vpop.f32.mrf.mxu1  ;;  %v2623_v23 = vpop.f32.mrf.mxu0 }
 0x837   : > { %2359 = vrot.lane.b32.xlu1 %v2350_v18, %s4907_s1  ;;  %s4909_s1 = smov 16  }
 0x83b   : > { %2362 = vrot.lane.b32.xlu1 %v2350_v18, %s4908_s6  ;;  %s4910_s6 = smov 8  }
 0x83f   : > { %2527 = vperm.xlu1 %3956, %v2517_v21  }
 0x843   : > { %2537 = vperm.xlu1 %3956, %v2519_v25   ;;  %v2656_v25 = vpack.c.bf16 %v2616_v10, %v2616_v10 }
 0x8a5   : > { %v2357_v37 = vpop.permute.xlu1 %2356 }
 0x8a9   : > { %v2360_v39 = vpop.permute.xlu1 %2359 }
 0x8aa   : > { %v2365_v43 = vcombine.low %v2350_v18, %v2360_v39  ;;  %v2366_v44 = vcombine.high %v2350_v18, %v2360_v39  ;;  %v2716_v39 = vsel %vm1879_vm5, %v2656_v25, 0 }
 0x8ac   : > { %v2373_v49 = vrot.slane %v2365_v43, %v4303_v51  ;;  %v2380_v50 = vrot.slane %v2366_v44, %v4303_v51 }
 0x8ad   : > { %v2363_v12 = vpop.permute.xlu1 %2362 }
 0x8ae   : > { %v2381_v13 = vcombine.low %v2357_v37, %v2363_v12  ;;  %v2382_v47 = vcombine.high %v2357_v37, %v2363_v12  ;;  %v2625_v37 = vpop.f32.mrf.mxu0 }
 0x8b0   : > { %v2389_v54 = vrot.slane %v2381_v13, %v4303_v51  ;;  %v2396_v55 = vrot.slane %v2382_v47, %v4303_v51  ;;  %v2627_v44 = vpop.f32.mrf.mxu0 }
 0x8b2   : > { %v2397_v56 = vcombine.low %v2373_v49, %v2389_v54  ;;  %v2398_v30 = vcombine.high %v2373_v49, %v2389_v54  ;;  %v2413_v31 = vcombine.low %v2380_v50, %v2396_v55  ;;  %v2414_v57 = vcombine.high %v2380_v50, %v2396_v55 }
 0x8b3   : > { %v2628_v49 = vadd.f32 %v2627_v44, %v2543_v48 }
 0x8b4   : > { %v2405_v33 = vrot.slane %v2397_v56, %v4313_v61  ;;  %v2412_v22 = vrot.slane %v2398_v30, %v4313_v61  ;;  %v2421_v59 = vrot.slane %v2413_v31, %v4313_v61  ;;  %v2428_v24 = vrot.slane %v2414_v57, %v4313_v61 }
 0x8b5   : > { %v2626_v30 = vadd.f32 %v2625_v37, %v2543_v48  ;;  %v2661_v31 = vpack.c.bf16 %v2628_v49, %v2628_v49 }
 0x8b6   : > { %v2433_v60 = vcombine.low %v2405_v33, %v2412_v22  ;;  %v3738_v63 = vcombine.high %v2405_v33, %v2412_v22  ;;  %v2449_v26 = vcombine.low %v2421_v59, %v2428_v24  ;;  %v3739_v27 = vcombine.high %v2421_v59, %v2428_v24 }
 0x8b7   : > { %v2660_v33 = vpack.c.bf16 %v2626_v30, %v2626_v30  ;;  %v2631_v30 = vpop.f32.mrf.mxu0 }
 0x8b8   : > { %v2440_v1 = vrot.slane %v2433_v60, %v4303_v51  ;;  %v2448_v2 = vrot.slane %v3738_v63, %v4303_v51  ;;  %v2456_v5 = vrot.slane %v2449_v26, %v4303_v51  ;;  %v2464_v28 = vrot.slane %v3739_v27, %v4303_v51  ;;  %v2507_v63 = vld [vmem:[%s4853_s16 + $0x30] sm:$0xff]  ;;  %v2508_v26 = vld [vmem:[%s4853_s16 + $0x38] sm:$0xff] }
 0x8b9   : > { %v2816_v59 = vsel %vm1879_vm5, %v2660_v33, 0  ;;  %v2512_v27 = vpack.c.bf16 %v2508_v26, %v2507_v63 }
 0x8ba   : > { %v2465_v6 = vcombine.low %v2440_v1, %v2448_v2  ;;  %v2481_v7 = vcombine.low %v2456_v5, %v2464_v28  ;;  %v2528_v8 = vpop.permute.xlu1 %2527  ;;  %v2466_v12 = vcombine.high %v2440_v1, %v2448_v2  ;;  %v2482_v13 = vcombine.high %v2456_v5, %v2464_v28 }
 0x8bb   : > { %v2612_v15 = vadd.f32 %v2611_v38, %v2528_v8  ;;  %v2614_v36 = vadd.f32 %v2613_v42, %v2528_v8  ;;  %3743 = vmatmul.mubr.msk.bf16.gmra.mxu0 %vm1075_vm1, %v2512_v27 }
 0x8bc   : > { %v2473_v16 = vrot.slane %v2465_v6, %v4313_v61  ;;  %v2489_v18 = vrot.slane %v2481_v7, %v4313_v61  ;;  %v2480_v55 = vrot.slane %v2466_v12, %v4313_v61  ;;  %v2496_v56 = vrot.slane %v2482_v13, %v4313_v61 }
 0x8bd   : > { %v2654_v19 = vpack.c.bf16 %v2612_v15, %v2612_v15  ;;  %v2655_v20 = vpack.c.bf16 %v2614_v36, %v2614_v36 }
 0x8be   : > { %v2538_v14 = vpop.permute.xlu1 %2537  ;;  %v2497_v21 = vcombine.low %v2473_v16, %v2489_v18  ;;  %v2498_v47 = vcombine.high %v2473_v16, %v2489_v18  ;;  %v2499_v58 = vcombine.low %v2480_v55, %v2496_v56  ;;  %v2500_v24 = vcombine.high %v2480_v55, %v2496_v56 }
 0x8bf   : > { %v2624_v40 = vadd.f32 %v2623_v23, %v2538_v14  ;;  %3744 = vmatprep.subr.msk.bf16.mxu1 %vm1879_vm5, %v2655_v20  ;;  %v2666_v34 = vsel %vm1879_vm5, %v2654_v19, 0  ;;  %v2622_v42 = vadd.f32 %v2621_v0, %v2538_v14 }
 0x8c0   : > { %2686 = vmatpush1.bf16.msra.mxu1 %v2666_v34  ;;  %v2650_v38 = vpack.c.bf16 %v2497_v21, %v2497_v21  ;;  %v2651_v54 = vpack.c.bf16 %v2498_v47, %v2498_v47  ;;  %v2652_v22 = vpack.c.bf16 %v2499_v58, %v2499_v58  ;;  %v2653_v60 = vpack.c.bf16 %v2500_v24, %v2500_v24 }
 0x8c1   : > { %3746 = vmatprep.subr.msk.bf16.mxu1 %vm1879_vm5, %v2657_v41  ;;  %v2659_v43 = vpack.c.bf16 %v2624_v40, %v2624_v40  ;;  %v2658_v50 = vpack.c.bf16 %v2622_v42, %v2622_v42  ;;  %v2521_v42 = vld [vmem:[%s4854_s17 + $0x20] sm:$0xff] }
 0x8c3   : > { %3745 = vmatmul.mubr.msk.bf16.vlgmr.msra.gmra.mxu1 %vm1627_vm4, %v2650_v38  ;;  %v2766_v57 = vsel %vm1879_vm5, %v2658_v50, 0 }
 0x8c4   : > { %2736 = vmatpush1.bf16.msra.mxu1 %v2716_v39  ;;  %2753 = vmatprep.mubr.bf16.mxu1 %v4028_v35 }
 0x8c5   : > { %3748 = vmatprep.subr.msk.bf16.mxu1 %vm1879_vm5, %v2659_v43  ;;  %v2522_v43 = vld [vmem:[%s4854_s17 + $0x28] sm:$0xff] }
 0x8cb   : > { %3747 = vmatmul.mubr.msk.bf16.vlgmr.msra.gmra.mxu1 %vm1627_vm4, %v2651_v54 }
 0x8cc   : > { %2786 = vmatpush1.bf16.msra.mxu1 %v2766_v57  ;;  %2803 = vmatprep.mubr.bf16.mxu1 %v4028_v35 }
 0x8cd   : > { %3750 = vmatprep.subr.msk.bf16.mxu1 %vm1879_vm5, %v2661_v31 }
 0x8d3   : > { %3749 = vmatmul.mubr.msk.bf16.vlgmr.msra.gmra.mxu1 %vm1627_vm4, %v2652_v22  ;;  %v2633_v22 = vpop.f32.mrf.mxu0 }
 0x8d4   : > { %2836 = vmatpush1.bf16.msra.mxu1 %v2816_v59  ;;  %2853 = vmatprep.mubr.bf16.mxu1 %v4028_v35 }
 0x8d5   : > { %v2635_v26 = vpop.f32.mrf.mxu0 }
 0x8db   : > { %3751 = vmatmul.mubr.msk.bf16.vlgmr.msra.gmra.mxu1 %vm1627_vm4, %v2653_v60 }
 0x983   : > { %v2705_v0 = vpop.f32.mrf.mxu1 }
 0x984   : > { %v2862_v2 = vmul.f32 0.35355338, %v2705_v0 }
 0x985   : > { %v2707_v1 = vpop.f32.mrf.mxu1 }
 0x986   : > { %v2863_v5 = vmul.f32 0.35355338, %v2707_v1 }
 0x987   : > { %v2709_v35 = vpop.f32.mrf.mxu1 }
 0x988   : > { %v2870_v28 = vmax.f32 %v2862_v2, %v2863_v5 }
 0x989   : > { %v2710_v29 = vpop.f32.mrf.mxu1 }
 0x98a   : > { %2871 = vmax.xlane.f32.xlu1 %v2870_v28  ;;  %v2637_v29 = vpop.f32.mrf.mxu0 }
 0x98b   : > { %v2755_v6 = vpop.f32.mrf.mxu1 }
 0x98c   : > { %v2864_v8 = vmul.f32 0.35355338, %v2755_v6 }
 0x98d   : > { %v2757_v7 = vpop.f32.mrf.mxu1 }
 0x98e   : > { %v2865_v10 = vmul.f32 0.35355338, %v2757_v7 }
 0x98f   : > { %v2759_v11 = vpop.f32.mrf.mxu1 }
 0x990   : > { %v2873_v15 = vmax.f32 %v2864_v8, %v2865_v10 }
 0x991   : > { %v2760_v36 = vpop.f32.mrf.mxu1 }
 0x992   : > { %2874 = vmax.xlane.f32.xlu0 %v2873_v15 }
 0x993   : > { %v2805_v23 = vpop.f32.mrf.mxu1 }
 0x994   : > { %v2866_v18 = vmul.f32 0.35355338, %v2805_v23 }
 0x995   : > { %v2807_v16 = vpop.f32.mrf.mxu1 }
 0x996   : > { %v2867_v19 = vmul.f32 0.35355338, %v2807_v16 }
 0x997   : > { %v2809_v20 = vpop.f32.mrf.mxu1 }
 0x998   : > { %v2876_v14 = vmax.f32 %v2866_v18, %v2867_v19 }
 0x999   : > { %v2810_v21 = vpop.f32.mrf.mxu1 }
 0x99a   : > { %2877 = vmax.xlane.f32.xlu0 %v2876_v14 }
 0x99b   : > { %v2855_v25 = vpop.f32.mrf.mxu1 }
 0x99c   : > { %v2868_v40 = vmul.f32 0.35355338, %v2855_v25 }
 0x99d   : > { %v2857_v41 = vpop.f32.mrf.mxu1 }
 0x99e   : > { %v2869_v34 = vmul.f32 0.35355338, %v2857_v41 }
 0x99f   : > { %v2859_v37 = vpop.f32.mrf.mxu1 }
 0x9a0   : > { %v2879_v38 = vmax.f32 %v2868_v40, %v2869_v34  ;;  %v2523_v37 = vld [vmem:[%s4854_s17 + $0x30] sm:$0xff] }
 0x9a1   : > { %v2860_v39 = vpop.f32.mrf.mxu1 }
 0x9a2   : > { %2880 = vmax.xlane.f32.xlu1 %v2879_v38 }
 0x9b0   : > { %2547 = vperm.xlu0 %3955, %v2521_v42   ;;  %v2641_v42 = vpop.f32.mrf.mxu0 }
 0x9b3   : > { %2552 = vperm.xlu1 %3956, %v2522_v43  }
 0xa13   : > { %v2872_v44 = vpop.xlane.xlu1 %2871 }
 0xa14   : > { %v2882_v12 = vsub.f32 %v2862_v2, %v2872_v44  ;;  %v2883_v13 = vsub.f32 %v2863_v5, %v2872_v44  ;;  %v2643_v44 = vpop.f32.mrf.mxu0 }
 0xa16   : > { %v2890_v47 = vmul.f32 1.442695, %v2882_v12  ;;  %v2892_v48 = vmul.f32 1.442695, %v2883_v13 }
 0xa18   : > { %3976 = vpow2.f32 %v2890_v47 }
 0xa19   : > { %3978 = vpow2.f32 %v2892_v48 }
 0xa1b   : > { %v2875_v49 = vpop.xlane.xlu0 %2874 }
 0xa1c   : > { %v2884_v50 = vsub.f32 %v2864_v8, %v2875_v49  ;;  %v2885_v54 = vsub.f32 %v2865_v10, %v2875_v49 }
 0xa1e   : > { %v2894_v55 = vmul.f32 1.442695, %v2884_v50  ;;  %v2896_v56 = vmul.f32 1.442695, %v2885_v54  ;;  %v2645_v50 = vpop.f32.mrf.mxu0 }
 0xa20   : > { %3980 = vpow2.f32 %v2894_v55  ;;  %v2647_v55 = vpop.f32.mrf.mxu0 }
 0xa21   : > { %3982 = vpow2.f32 %v2896_v56 }
 0xa23   : > { %v2878_v31 = vpop.xlane.xlu0 %2877 }
 0xa24   : > { %v2886_v57 = vsub.f32 %v2866_v18, %v2878_v31  ;;  %v2887_v58 = vsub.f32 %v2867_v19, %v2878_v31 }
 0xa25   : > { %v3977_v33 = vpop.eup %3976 }
 0xa26   : > { %v3979_v59 = vpop.eup %3978  ;;  %v2898_v24 = vmul.f32 1.442695, %v2886_v57  ;;  %v2900_v60 = vmul.f32 1.442695, %v2887_v58 }
 0xa27   : > { %v2906_v63 = vadd.f32 %v3979_v59, %v3977_v33 }
 0xa28   : > { %3984 = vpow2.f32 %v2898_v24 }
 0xa29   : > { %3986 = vpow2.f32 %v2900_v60  ;;  %2907 = vadd.xlane.f32.xlu0 %v2906_v63 }
 0xa2b   : > { %v2548_v27 = vpop.permute.xlu0 %2547  ;;  %v2881_v0 = vpop.xlane.xlu1 %2880 }
 0xa2c   : > { %v2632_v1 = vadd.f32 %v2631_v30, %v2548_v27  ;;  %v2634_v2 = vadd.f32 %v2633_v22, %v2548_v27  ;;  %v2888_v5 = vsub.f32 %v2868_v40, %v2881_v0  ;;  %v2889_v35 = vsub.f32 %v2869_v34, %v2881_v0  ;;  %v2524_v34 = vld [vmem:[%s4854_s17 + $0x38] sm:$0xff] }
 0xa2d   : > { %v3981_v28 = vpop.eup %3980 }
 0xa2e   : > { %v3983_v6 = vpop.eup %3982  ;;  %v2938_v7 = vpack.c.bf16 %v2632_v1, %v2632_v1  ;;  %v2939_v8 = vpack.c.bf16 %v2634_v2, %v2634_v2  ;;  %v2902_v10 = vmul.f32 1.442695, %v2888_v5  ;;  %v2904_v11 = vmul.f32 1.442695, %v2889_v35 }
 0xa2f   : > { %v2553_v15 = vpop.permute.xlu1 %2552  ;;  %v2909_v36 = vadd.f32 %v3983_v6, %v3981_v28 }
 0xa30   : > { %3988 = vpow2.f32 %v2902_v10  ;;  %v2636_v23 = vadd.f32 %v2635_v26, %v2553_v15  ;;  %v2638_v16 = vadd.f32 %v2637_v29, %v2553_v15  ;;  %2960 = vmatprep.subr.bf16.mxu0 %v2939_v8 }
 0xa31   : > { %3990 = vpow2.f32 %v2904_v11  ;;  %2910 = vadd.xlane.f32.xlu1 %v2909_v36  ;;  %2961 = vmatpush1.bf16.xpose.msra.mxu0 %v2938_v7 }
 0xa32   : > { %v2940_v18 = vpack.c.bf16 %v2636_v23, %v2636_v23  ;;  %v2941_v19 = vpack.c.bf16 %v2638_v16, %v2638_v16 }
 0xa34   : > { %3000 = vmatprep.subr.bf16.mxu1 %v2941_v19 }
 0xa35   : > { %v3985_v20 = vpop.eup %3984  ;;  %3001 = vmatpush1.bf16.xpose.msra.mxu1 %v2940_v18 }
 0xa36   : > { %v3987_v14 = vpop.eup %3986 }
 0xa37   : > { %v2912_v21 = vadd.f32 %v3987_v14, %v3985_v20 }
 0xa39   : > { %2913 = vadd.xlane.f32.xlu0 %v2912_v21 }
 0xa3d   : > { %v3989_v25 = vpop.eup %3988 }
 0xa3e   : > { %v3991_v41 = vpop.eup %3990 }
 0xa3f   : > { %v2915_v40 = vadd.f32 %v3991_v41, %v3989_v25 }
 0xa41   : > { %2916 = vadd.xlane.f32.xlu1 %v2915_v40 }
 0xa4f   : > { %2562 = vperm.xlu0 %3955, %v2524_v34  }
 0xa52   : > { %2557 = vperm.xlu1 %3956, %v2523_v37  }
 0xab2   : > { %v2908_v38 = vpop.xlane.xlu0 %2907 }
 0xab3   : > { %3992 = vrcp.f32 %v2908_v38 }
 0xaba   : > { %v2911_v39 = vpop.xlane.xlu1 %2910 }
 0xabb   : > { %3994 = vrcp.f32 %v2911_v39 }
 0xac0   : > { %v3993_v43 = vpop.eup %3992 }
 0xac1   : > { %v2920_v12 = vmul.f32 %v3993_v43, %v3979_v59  ;;  %v2919_v13 = vmul.f32 %v3993_v43, %v3977_v33 }
 0xac2   : > { %v2914_v47 = vpop.xlane.xlu0 %2913 }
 0xac3   : > { %3996 = vrcp.f32 %v2914_v47  ;;  %v2931_v48 = vpack.c.bf16 %v2920_v12, %v2920_v12  ;;  %v2930_v49 = vpack.c.bf16 %v2919_v13, %v2919_v13 }
 0xac5   : > { %2978 = vmatprep.mubr.bf16.mxu0 %v2931_v48 }
 0xac6   : > { %2979 = vmatmul.mubr.bf16.vlgmr.msra.gmra.mxu0 %v2930_v49  ;;  %v3259_v49 = vld [vmem:[%s4855_s18 + $0x10] sm:$0xff] }
 0xac8   : > { %v3995_v54 = vpop.eup %3994 }
 0xac9   : > { %v2923_v56 = vmul.f32 %v3995_v54, %v3983_v6  ;;  %v2922_v30 = vmul.f32 %v3995_v54, %v3981_v28 }
 0xaca   : > { %v2563_v31 = vpop.permute.xlu0 %2562  ;;  %v2917_v57 = vpop.xlane.xlu1 %2916 }
 0xacb   : > { %v2646_v58 = vadd.f32 %v2645_v50, %v2563_v31  ;;  %v2648_v22 = vadd.f32 %v2647_v55, %v2563_v31  ;;  %3998 = vrcp.f32 %v2917_v57  ;;  %v2933_v24 = vpack.c.bf16 %v2923_v56, %v2923_v56  ;;  %v3260_v50 = vld [vmem:[%s4855_s18 + $0x18] sm:$0xff] }
 0xacc   : > { %v2932_v60 = vpack.c.bf16 %v2922_v30, %v2922_v30  ;;  %v3263_v57 = vpack.c.bf16 %v3260_v50, %v3259_v49  ;;  %v3342_v50 = vld [vmem:[%s4857_s20 + $0x10] sm:$0xff] }
 0xacd   : > { %v2944_v59 = vpack.c.bf16 %v2646_v58, %v2646_v58  ;;  %v2945_v33 = vpack.c.bf16 %v2648_v22, %v2648_v22  ;;  %3018 = vmatprep.mubr.bf16.mxu1 %v2933_v24 }
 0xace   : > { %3019 = vmatmul.mubr.bf16.vlgmr.msra.gmra.mxu1 %v2932_v60  ;;  %v2558_v63 = vpop.permute.xlu1 %2557 }
 0xacf   : > { %v2642_v26 = vadd.f32 %v2641_v42, %v2558_v63  ;;  %v2644_v27 = vadd.f32 %v2643_v44, %v2558_v63  ;;  %3080 = vmatprep.subr.bf16.mxu1 %v2945_v33  ;;  %v3258_v33 = vld [vmem:[%s4855_s18 + $0x8] sm:$0xff] }
 0xad0   : > { %v3997_v0 = vpop.eup %3996  ;;  %3081 = vmatpush1.bf16.xpose.msra.mxu1 %v2944_v59  ;;  %v3257_v59 = vld [vmem:[%s4855_s18] sm:$0xff] }
 0xad1   : > { %v2942_v1 = vpack.c.bf16 %v2642_v26, %v2642_v26  ;;  %v2943_v2 = vpack.c.bf16 %v2644_v27, %v2644_v27  ;;  %v2926_v5 = vmul.f32 %v3997_v0, %v3987_v14  ;;  %3901 = vmatprep.subr.bf16.mxu1 %v4022_v3  ;;  %v2925_v28 = vmul.f32 %v3997_v0, %v3985_v20 }
 0xad3   : > { %3040 = vmatprep.subr.bf16.mxu0 %v2943_v2  ;;  %v2935_v35 = vpack.c.bf16 %v2926_v5, %v2926_v5  ;;  %v2934_v6 = vpack.c.bf16 %v2925_v28, %v2925_v28 }
 0xad4   : > { %3041 = vmatpush1.bf16.xpose.msra.mxu0 %v2942_v1  ;;  %v3262_v1 = vpack.c.bf16 %v3258_v33, %v3257_v59 }
 0xad5   : > { %3058 = vmatprep.mubr.bf16.mxu0 %v2935_v35  ;;  %3893 = vmatprep.subr.bf16.mxu0 %v4022_v3 }
 0xad8   : > { %v3999_v29 = vpop.eup %3998 }
 0xad9   : > { %v2929_v7 = vmul.f32 %v3999_v29, %v3991_v41  ;;  %v2928_v8 = vmul.f32 %v3999_v29, %v3989_v25 }
 0xadb   : > { %3059 = vmatmul.mubr.bf16.vlgmr.msra.gmra.mxu0 %v2934_v6  ;;  %v2937_v10 = vpack.c.bf16 %v2929_v7, %v2929_v7  ;;  %v2936_v11 = vpack.c.bf16 %v2928_v8, %v2928_v8 }
 0xadc   : > { %3897 = vmatprep.mubr.msk.bf16.mxu0 %vm4023_vm0, %v4022_v3  ;;  %3894 = vmatpush3.bf16.msra.mxu0 %v3263_v57  ;;  %v3405_v57 = vld [vmem:[%s4859_s22 + $0x38] sm:$0xff] }
 0xadd   : > { %3098 = vmatprep.mubr.bf16.mxu1 %v2937_v10  ;;  %3895 = vmatprep.subr.bf16.mxu0 %v4022_v3 }
 0xade   : > { %3099 = vmatmul.mubr.bf16.vlgmr.msra.gmra.mxu1 %v2936_v11 }
 0xadf   : > { %3905 = vmatprep.mubr.msk.bf16.mxu1 %vm4023_vm0, %v4022_v3 }
 0xae0   : > { %3896 = vmatpush3.bf16.msra.mxu0 %v3262_v1  ;;  %v3757_v1 = vld [vmem:[%s4862_s25 + $0x1] ss:$0 sm:$0xff] }
 0xae1   : > { %3909 = vmatprep.subr.bf16.mxu0 %v4022_v3 }
 0xb86   : > { %v2980_v15 = vpop.f32.mrf.mxu0 }
 0xb88   : > { %v2982_v36 = vpop.f32.mrf.mxu0 }
 0xb8a   : > { %v2983_v23 = vpop.f32.mrf.mxu0 }
 0xb8c   : > { %v2984_v16 = vpop.f32.mrf.mxu0 }
 0xb8e   : > { %v3020_v18 = vpop.f32.mrf.mxu1 }
 0xb90   : > { %v3022_v19 = vpop.f32.mrf.mxu1 }
 0xb92   : > { %v3023_v20 = vpop.f32.mrf.mxu1 }
 0xb94   : > { %v3024_v14 = vpop.f32.mrf.mxu1 }
 0xb9b   : > { %v3060_v21 = vpop.f32.mrf.mxu0 }
 0xb9c   : > { %v3106_v25 = vcombine.low %v2980_v15, %v3060_v21  ;;  %v3107_v41 = vcombine.high %v2980_v15, %v3060_v21 }
 0xb9d   : > { %v3062_v40 = vpop.f32.mrf.mxu0 }
 0xb9e   : > { %v3100_v34 = vpop.f32.mrf.mxu1  ;;  %v3114_v43 = vrot.slane %v3106_v25, %v4303_v51  ;;  %v3121_v44 = vrot.slane %v3107_v41, %v4303_v51  ;;  %v3754_v40 = vld [vmem:[%s4856_s19] ss:$0 sm:$0xff] }
 0xb9f   : > { %v3122_v37 = vcombine.low %v3020_v18, %v3100_v34  ;;  %v3123_v38 = vcombine.high %v3020_v18, %v3100_v34  ;;  %v3063_v39 = vpop.f32.mrf.mxu0 }
 0xba0   : > { %v3102_v42 = vpop.f32.mrf.mxu1 }
 0xba1   : > { %v3130_v12 = vrot.slane %v3122_v37, %v4303_v51  ;;  %v3137_v13 = vrot.slane %v3123_v38, %v4303_v51  ;;  %v3064_v47 = vpop.f32.mrf.mxu0 }
 0xba2   : > { %v3103_v48 = vpop.f32.mrf.mxu1 }
 0xba3   : > { %v3138_v54 = vcombine.low %v3114_v43, %v3130_v12  ;;  %v3139_v55 = vcombine.high %v3114_v43, %v3130_v12  ;;  %v3154_v56 = vcombine.low %v3121_v44, %v3137_v13  ;;  %v3155_v30 = vcombine.high %v3121_v44, %v3137_v13 }
 0xba4   : > { %v3104_v31 = vpop.f32.mrf.mxu1 }
 0xba5   : > { %v3146_v58 = vrot.slane %v3138_v54, %v4313_v61  ;;  %v3153_v22 = vrot.slane %v3139_v55, %v4313_v61  ;;  %v3162_v24 = vrot.slane %v3154_v56, %v4313_v61  ;;  %v3169_v60 = vrot.slane %v3155_v30, %v4313_v61  ;;  %v3340_v55 = vld [vmem:[%s4857_s20] sm:$0xff]  ;;  %v3341_v56 = vld [vmem:[%s4857_s20 + $0x8] sm:$0xff]  ;;  %v3404_v31 = vld [vmem:[%s4859_s22 + $0x30] sm:$0xff] }
 0xba6   : > { %v3345_v30 = vpack.c.bf16 %v3341_v56, %v3340_v55  ;;  %v3762_v56 = vld [vmem:[%s4861_s24 + $0x2] ss:$0 sm:$0xff] }
 0xba7   : > { %v3174_v63 = vcombine.low %v3146_v58, %v3153_v22  ;;  %v3752_v26 = vcombine.high %v3146_v58, %v3153_v22  ;;  %v3190_v27 = vcombine.low %v3162_v24, %v3169_v60  ;;  %v3753_v0 = vcombine.high %v3162_v24, %v3169_v60  ;;  %v3402_v58 = vld [vmem:[%s4859_s22 + $0x20] sm:$0xff]  ;;  %v3403_v24 = vld [vmem:[%s4859_s22 + $0x28] sm:$0xff] }
 0xba8   : > { %v3410_v22 = vpack.c.bf16 %v3405_v57, %v3404_v31  ;;  %v3409_v60 = vpack.c.bf16 %v3403_v24, %v3402_v58  ;;  %v3763_v31 = vld [vmem:[%s4862_s25 + $0x2] ss:$0 sm:$0xff] }
 0xba9   : > { %v3181_v2 = vrot.slane %v3174_v63, %v4303_v51  ;;  %v3189_v5 = vrot.slane %v3752_v26, %v4303_v51  ;;  %v3197_v35 = vrot.slane %v3190_v27, %v4303_v51  ;;  %v3205_v28 = vrot.slane %v3753_v0, %v4303_v51  ;;  %v3756_v27 = vld [vmem:[%s4861_s24 + $0x1] ss:$0 sm:$0xff] }
 0xbab   : > { %v3207_v29 = vcombine.high %v3181_v2, %v3189_v5  ;;  %v3223_v6 = vcombine.high %v3197_v35, %v3205_v28  ;;  %v3206_v7 = vcombine.low %v3181_v2, %v3189_v5  ;;  %v3222_v8 = vcombine.low %v3197_v35, %v3205_v28  ;;  %v3400_v28 = vld [vmem:[%s4859_s22 + $0x10] sm:$0xff] }
 0xbad   : > { %v3221_v10 = vrot.slane %v3207_v29, %v4313_v61  ;;  %v3237_v11 = vrot.slane %v3223_v6, %v4313_v61  ;;  %v3214_v15 = vrot.slane %v3206_v7, %v4313_v61  ;;  %v3230_v36 = vrot.slane %v3222_v8, %v4313_v61  ;;  %v3401_v29 = vld [vmem:[%s4859_s22 + $0x18] sm:$0xff]  ;;  %v3398_v7 = vld [vmem:[%s4859_s22] sm:$0xff]  ;;  %v3399_v8 = vld [vmem:[%s4859_s22 + $0x8] sm:$0xff] }
 0xbae   : > { %v3408_v6 = vpack.c.bf16 %v3401_v29, %v3400_v28 }
 0xbaf   : > { %v3240_v23 = vcombine.low %v3221_v10, %v3237_v11  ;;  %v3239_v16 = vcombine.high %v3214_v15, %v3230_v36  ;;  %v3238_v18 = vcombine.low %v3214_v15, %v3230_v36  ;;  %v3241_v51 = vcombine.high %v3221_v10, %v3237_v11  ;;  %v3758_v11 = vld [vmem:[%s4858_s21] ss:$0 sm:$0xff] }
 0xbb0   : > { %v3407_v10 = vpack.c.bf16 %v3399_v8, %v3398_v7  ;;  %v1033_v8 = vld [vmem:[%s4912_s10 + $0x10] sm:$0xff] }
 0xbb1   : > { %3247 = vrot.lane.b32.xlu0 %v3240_v23, %s4909_s1  ;;  %3243 = vrot.lane.b32.xlu1 %v3239_v16, %s4910_s6  ;;  %s4035_s6 = smov 123  }
 0xbb5   : > { %3251 = vrot.lane.b32.xlu1 %v3241_v51, %s4911_s7  ;;  %s4036_s7 = smov 124  }
 0xc23   : > { %v3244_v19 = vpop.permute.xlu1 %3243  ;;  %v3248_v20 = vpop.permute.xlu0 %3247 }
 0xc24   : > { %v3254_v14 = vsel %vm1627_vm4, %v3238_v18, %v3244_v19 }
 0xc25   : > { %v3255_v25 = vsel %vm2210_vm7, %v3254_v14, %v3248_v20  ;;  %v3761_v14 = vld [vmem:[%s4860_s23] ss:$0 sm:$0xff] }
 0xc27   : > { %v3252_v21 = vpop.permute.xlu1 %3251 }
 0xc28   : > { %v3256_v41 = vsel %vm2212_vm6, %v3255_v25, %v3252_v21 }
 0xc29   : > { %v3261_v61 = vpack.c.bf16 %v3256_v41, %v3256_v41 }
 0xc2b   : > { %3898 = vmatmul.mubr.msk.bf16.vlgmr.msra.gmra.mxu0 %vm1075_vm1, %v3261_v61 }
 0xc2c   : > { %3917 = vmatprep.mubr.msk.bf16.mxu0 %vm4023_vm0, %v4022_v3  ;;  %3910 = vmatpush3.bf16.msra.mxu0 %v3410_v22 }
 0xc2d   : > { %3911 = vmatprep.subr.bf16.mxu0 %v4022_v3 }
 0xc30   : > { %3912 = vmatpush3.bf16.msra.mxu0 %v3409_v60 }
 0xc31   : > { %3913 = vmatprep.subr.bf16.mxu0 %v4022_v3 }
 0xc34   : > { %3914 = vmatpush3.bf16.msra.mxu0 %v3408_v6  ;;  %v1031_v6 = vld [vmem:[%s4912_s10] sm:$0xff] }
 0xc35   : > { %3915 = vmatprep.subr.bf16.mxu0 %v4022_v3 }
 0xc38   : > { %3916 = vmatpush3.bf16.msra.mxu0 %v3407_v10 }
 0xceb   : > { %v3308_v34 = vpop.f32.mrf.mxu0 }
 0xcec   : > { %v3309_v37 = vadd.f32 %v3754_v40, %v3308_v34 }
 0xced   : > { %v3899_v38 = vpop.f32.mrf.mxu0 }
 0xcee   : > { %v3314_v39 = vadd.f32 %v3309_v37, %v4563_v9  ;;  %v3343_v9 = vld [vmem:[%s4857_s20 + $0x18] sm:$0xff] }
 0xcef   : > { %v3311_v42 = vpop.f32.mrf.mxu0  ;;  %v3346_v54 = vpack.c.bf16 %v3343_v9, %v3342_v50 }
 0xcf0   : > { %v3315_v43 = vsel %vm1075_vm1, %v3314_v39, 0.0 }
 0xcf1   : > { %3316 = vadd.xlane.f32.xlu0 %v3315_v43  ;;  %v3900_v44 = vpop.f32.mrf.mxu0  ;;  %3902 = vmatpush3.bf16.msra.mxu1 %v3346_v54 }
 0xcf2   : > { %3903 = vmatprep.subr.bf16.mxu1 %v4022_v3  ;;  %v3491_v44 = vld [vmem:[%s4863_s26 + $0x10] sm:$0xff] }
 0xcf5   : > { %3904 = vmatpush3.bf16.msra.mxu1 %v3345_v30 }
 0xcf6   : > { %3921 = vmatprep.subr.bf16.mxu1 %v4022_v3 }
 0xd7a   : > { %v3317_v12 = vpop.xlane.xlu0 %3316 }
 0xd7b   : > { %v3318_v13 = vmul.f32 0.03125, %v3317_v12  ;;  %v3492_v12 = vld [vmem:[%s4863_s26 + $0x18] sm:$0xff] }
 0xd7d   : > { %v3319_v47 = vsub.f32 %v3314_v39, %v3318_v13  ;;  %v3495_v13 = vpack.c.bf16 %v3492_v12, %v3491_v44 }
 0xd7f   : > { %v3320_v48 = vmul.f32 %v3319_v47, %v3319_v47 }
 0xd81   : > { %v3321_v49 = vsel %vm1075_vm1, %v3320_v48, 0.0  ;;  %v3490_v48 = vld [vmem:[%s4863_s26 + $0x8] sm:$0xff] }
 0xd82   : > { %3322 = vadd.xlane.f32.xlu1 %v3321_v49 }
 0xe0b   : > { %v3323_v59 = vpop.xlane.xlu1 %3322 }
 0xe0c   : > { %v3324_v33 = vmul.f32 0.03125, %v3323_v59 }
 0xe0e   : > { %v3325_v63 = vadd.f32 1e-05, %v3324_v33 }
 0xe10   : > { %4000 = vrsqrt.f32 %v3325_v63 }
 0xe1d   : > { %v4001_v26 = vpop.eup %4000 }
 0xe1e   : > { %v3327_v0 = vmul.f32 %v4001_v26, %v3319_v47  ;;  %v3489_v47 = vld [vmem:[%s4863_s26] sm:$0xff] }
 0xe1f   : > { %v3494_v49 = vpack.c.bf16 %v3490_v48, %v3489_v47 }
 0xe20   : > { %v3333_v2 = vmul.f32 %v3756_v27, %v3327_v0 }
 0xe22   : > { %v3339_v5 = vadd.f32 %v3757_v1, %v3333_v2  ;;  %v1020_v1 = vadd.f32 %v1011_v53, %v1010_v52  ;;  %v1032_v53 = vld [vmem:[%s4912_s10 + $0x8] sm:$0xff] }
 0xe24   : > { %v3344_v35 = vpack.c.bf16 %v3339_v5, %v3339_v5 }
 0xe26   : > { %3906 = vmatmul.mubr.msk.bf16.vlgmr.msra.gmra.mxu1 %vm1075_vm1, %v3344_v35 }
 0xe27   : > { %3925 = vmatprep.mubr.msk.bf16.mxu1 %vm4023_vm0, %v4022_v3  ;;  %3922 = vmatpush3.bf16.msra.mxu1 %v3495_v13  ;;  %v1052_v13 = vld [vmem:[%s4913_s2] sm:$0x1] }
 0xe28   : > { %3923 = vmatprep.subr.bf16.mxu1 %v4022_v3  ;;  %v3764_v3 = vld [vmem:[%s4864_s27] ss:$0 sm:$0xff] }
 0xe2b   : > { %3924 = vmatpush3.bf16.msra.mxu1 %v3494_v49 }
 0xee6   : > { %v3391_v15 = vpop.f32.mrf.mxu1 }
 0xee7   : > { %v3392_v36 = vadd.f32 %v3758_v11, %v3391_v15 }
 0xee8   : > { %v3907_v23 = vpop.f32.mrf.mxu1 }
 0xee9   : > { %v3397_v16 = vmax.f32 %v3392_v36, 0.0 }
 0xeea   : > { %v3394_v18 = vpop.f32.mrf.mxu1 }
 0xeeb   : > { %v3406_v51 = vpack.c.bf16 %v3397_v16, %v3397_v16  ;;  %v1034_v16 = vld [vmem:[%s4912_s10 + $0x18] sm:$0xff] }
 0xeec   : > { %v3908_v19 = vpop.f32.mrf.mxu1 }
 0xeed   : > { %3918 = vmatmul.mubr.msk.bf16.vlgmr.msra.gmra.mxu0 %vm3411_vm8, %v3406_v51 }
 0xfad   : > { %v3449_v20 = vpop.f32.mrf.mxu0 }
 0xfae   : > { %v3455_v21 = vadd.f32 %v3449_v20, %v3339_v5  ;;  %v901_v5 = vld [vmem:[%s4383_s8] sm:$0xff] }
 0xfaf   : > { %v3919_v25 = vpop.f32.mrf.mxu0 }
 0xfb0   : > { %v3463_v41 = vadd.f32 %v3761_v14, %v3455_v21 }
 0xfb1   : > { %v3452_v61 = vpop.f32.mrf.mxu0 }
 0xfb2   : > { %v3464_v40 = vsel %vm1075_vm1, %v3463_v41, 0.0 }
 0xfb3   : > { %3465 = vadd.xlane.f32.xlu0 %v3464_v40  ;;  %v3920_v34 = vpop.f32.mrf.mxu0 }
0x103c   : > { %v3466_v37 = vpop.xlane.xlu0 %3465 }
0x103d   : > { %v3467_v38 = vmul.f32 0.03125, %v3466_v37 }
0x103f   : > { %v3468_v39 = vsub.f32 %v3463_v41, %v3467_v38 }
0x1041   : > { %v3469_v42 = vmul.f32 %v3468_v39, %v3468_v39 }
0x1043   : > { %v3470_v43 = vsel %vm1075_vm1, %v3469_v42, 0.0 }
0x1044   : > { %3471 = vadd.xlane.f32.xlu0 %v3470_v43 }
0x10cd   : > { %v3472_v50 = vpop.xlane.xlu0 %3471 }
0x10ce   : > { %v3473_v9 = vmul.f32 0.03125, %v3472_v50 }
0x10d0   : > { %v3474_v54 = vadd.f32 1e-05, %v3473_v9 }
0x10d2   : > { %4002 = vrsqrt.f32 %v3474_v54  ;;  %v3711_v54 = vld [vmem:[%s4914_s30] ss:$0 sm:$0xff] }
0x10df   : > { %v4003_v55 = vpop.eup %4002 }
0x10e0   : > { %v3476_v30 = vmul.f32 %v4003_v55, %v3468_v39  ;;  %v1114_v55 = vadd.f32 %v3711_v54, %v4247_v17 }
0x10e2   : > { %v3482_v57 = vmul.f32 %v3762_v56, %v3476_v30  ;;  %v3593_v56 = vsel %vm2210_vm7, %v1114_v55, 0.0 }
0x10e4   : > { %v3488_v58 = vadd.f32 %v3763_v31, %v3482_v57  ;;  %v3595_v31 = vrot.slane %v3593_v56, 7 }
0x10e6   : > { %v3493_v22 = vpack.c.bf16 %v3488_v58, %v3488_v58 }
0x10e8   : > { %3926 = vmatmul.mubr.msk.bf16.vlgmr.msra.gmra.mxu1 %vm1075_vm1, %v3493_v22 }
0x11a8   : > { %v3540_v24 = vpop.f32.mrf.mxu1 }
0x11a9   : > { %v4780_v60 = vadd.f32 %v3764_v3, %v3540_v24 }
0x11aa   : > { %v3927_v59 = vpop.f32.mrf.mxu1 }
0x11ab   : > { %v3559_v33 = vmul.f32 0.5, %v4780_v60  ;;  %v3547_v63 = vsel %vm3546_vm9, %v4780_v60, -inf }
0x11ac   : > { %3548 = vmax.xlane.f32.xlu1 %v3547_v63  ;;  %v3543_v26 = vpop.f32.mrf.mxu1 }
0x11ad   : > { %v3560_v27 = vmul.f32 1.442695, %v3559_v33 }
0x11ae   : > { %v3928_v0 = vpop.f32.mrf.mxu1 }
0x11af   : > { %4004 = vpow2.f32 %v3560_v27 }
0x11b0   : > { %1015 = vadd.xlane.f32.xlu1 %v4546_v62 }
0x11b4   : > { %1018 = vadd.xlane.f32.xlu1 %v4554_v4 }
0x11b8   : > { %1021 = vadd.xlane.f32.xlu1 %v1020_v1 }
0x11bc   : > { %v4005_v2 = vpop.eup %4004  ;;  %1024 = vadd.xlane.f32.xlu1 %v4542_v32 }
0x11bd   : > { %3573 = vrot.lane.b32.xlu0 %v4005_v2, %s4035_s6 }
0x11cd   : > { %3563 = vrot.lane.b32.xlu1 %v4005_v2, %s4036_s7  ;;  %s4038_s7 = smov 3  }
0x122f   : > { %v3574_v35 = vpop.permute.xlu0 %3573 }
0x1230   : > { %v3576_v28 = vmul.f32 %v3574_v35, %v901_v5 }
0x1232   : > { %3578 = vrot.lane.b32.xlu0 %v3576_v28, %s4037_s0  ;;  %s4039_s0 = smov 127  }
0x1235   : > { %v4793_v62 = vpop.xlane.xlu1 %3548 }
0x1236   : > { %v3550_v45 = vsub.f32 %v4780_v60, %v4793_v62 }
0x1238   : > { %v3551_v52 = vmul.f32 1.442695, %v3550_v45 }
0x1239   : > { %v1016_v46 = vpop.xlane.xlu1 %1015 }
0x123a   : > { %v1027_v4 = vmul.f32 0.00390625, %v1016_v46  ;;  %4006 = vpow2.f32 %v3551_v52 }
0x123c   : > { %v1035_v11 = vmul.f32 %v1031_v6, %v1027_v4 }
0x123d   : > { %v1019_v32 = vpop.xlane.xlu1 %1018 }
0x123e   : > { %v1028_v29 = vmul.f32 0.00390625, %v1019_v32  ;;  %v1039_v51 = vsel %vm939_vm3, %v1035_v11, 0.0 }
0x1240   : > { %v1036_v7 = vmul.f32 %v1032_v53, %v1028_v29 }
0x1241   : > { %v1022_v10 = vpop.xlane.xlu1 %1021 }
0x1242   : > { %v1029_v15 = vmul.f32 0.00390625, %v1022_v10  ;;  %v1040_v36 = vsel %vm939_vm3, %v1036_v7, 0.0 }
0x1243   : > { %v1041_v14 = vadd.f32 %v1040_v36, %v1039_v51 }
0x1244   : > { %v1037_v23 = vmul.f32 %v1033_v8, %v1029_v15 }
0x1245   : > { %v1025_v18 = vpop.xlane.xlu1 %1024 }
0x1246   : > { %v1042_v19 = vsel %vm939_vm3, %v1037_v23, 0.0  ;;  %v1030_v20 = vmul.f32 0.00390625, %v1025_v18 }
0x1247   : > { %v1043_v25 = vadd.f32 %v1042_v19, %v1041_v14  ;;  %v4007_v37 = vpop.eup %4006 }
0x1248   : > { %v1038_v21 = vmul.f32 %v1034_v16, %v1030_v20  ;;  %v3553_v42 = vsel %vm3546_vm9, %v4007_v37, 0.0 }
0x1249   : > { %v3564_v41 = vpop.permute.xlu1 %3563 }
0x124a   : > { %v1044_v61 = vsel %vm939_vm3, %v1038_v21, 0.0  ;;  %v3566_v40 = vmul.f32 %v3564_v41, %v901_v5 }
0x124b   : > { %v1045_v34 = vadd.f32 %v1044_v61, %v1043_v25 }
0x124c   : > { %3568 = vrot.lane.b32.xlu1 %v3566_v40, %s4038_s7  ;;  %s899_s7 = scalar_lea.vmem %s4865_s28, %s4915_s12 }
0x124d   : > { %v1046_v38 = vrot.slane %v1045_v34, 4 }
0x124f   : > { %v1047_v39 = vadd.f32 %v1046_v38, %v1045_v34 }
0x1251   : > { %v1048_v43 = vrot.slane %v1047_v39, 2  ;;  %3554 = vadd.xlane.f32.xlu0 %v3553_v42 }
0x1253   : > { %v1049_v44 = vadd.f32 %v1048_v43, %v1047_v39 }
0x1255   : > { %v1050_v12 = vrot.slane %v1049_v44, 1 }
0x1257   : > { %v1051_v47 = vadd.f32 %v1050_v12, %v1049_v44 }
0x1259   : > { %v1053_v48 = vadd.f32 %v1052_v13, %v1051_v47 }
0x125b   : > { %v3710_v49 = vmul.f32 -1.442695, %v1053_v48 }
0x125d   : > { %4008 = vpow2.f32 %v3710_v49 }
0x126a   : > { %v4009_v50 = vpop.eup %4008 }
0x126b   : > { %v1057_v9 = vadd.f32 1.0, %v4009_v50 }
0x126d   : > { %4010 = vrcp.f32 %v1057_v9 }
0x127a   : > { %v4011_v30 = vpop.eup %4010 }
0x127b   : > { %v3592_v57 = vsel %vm939_vm3, %v4011_v30, 0.0 }
0x127c   : > { %v3598_v58 = vsel %vm3597_vm10, %v3592_v57, %v3595_v31 }
0x127d   : > { %v3600_v22 = vsel %vm3599_vm11, %v3598_v58, 0.0 }
0x127e   : > { %3602 = vst [vmem:[%s899_s7 + $0x8] sm:$0xff] %v3600_v22 }
0x12a4   : > { %v3579_v3 = vpop.permute.xlu0 %3578 }
0x12a5   : > { %v3581_v24 = vadd.f32 %v3579_v3, %v4780_v60 }
0x12a7   : > { %v3582_v17 = vmax.f32 %v3581_v24, 0.0 }
0x12a9   : > { %3585 = vrot.lane.b32.xlu1 %v3582_v17, %s4039_s0 }
0x12be   : > { %v3569_v26 = vpop.permute.xlu1 %3568 }
0x12bf   : > { %v3571_v0 = vadd.f32 %v3569_v26, %v4780_v60 }
0x12c1   : > { %v3572_v2 = vmax.f32 %v3571_v0, 0.0 }
0x12da   : > { %v3555_v59 = vpop.xlane.xlu0 %3554 }
0x12db   : > { %4012 = vlog2.f32 %v3555_v59 }
0x12e8   : > { %v4013_v33 = vpop.eup %4012 }
0x12e9   : > { %v3557_v63 = vmul.f32 0.6931472, %v4013_v33 }
0x12eb   : > { %v3558_v27 = vadd.f32 %v3557_v63, %v4793_v62 }
0x12ed   : > { %v3583_v1 = vsub.f32 %v4780_v60, %v3558_v27 }
0x12ef   : > { %v3588_v5 = vsel %vm3546_vm9, %v3583_v1, %v3572_v2 }
0x131b   : > { %v3586_v35 = vpop.permute.xlu1 %3585 }
0x131c   : > { %v3589_v28 = vsel %vm939_vm3, %v3588_v5, %v3586_v35 }
0x131d   : > { %v3591_v45 = vsel %vm3590_vm12, %v3589_v28, 0.0 }
0x131e   : > { %3601 = vst [vmem:[%s899_s7] sm:$0xff] %v3591_v45 }
0x131f PF: > { %s4916_s5 = sld [smem:[#allocation2_spill]] }
0x1325   : > { %s38_s8 = sadd.s32 1, %s4916_s5  }
0x1326   : > { %p35_p4 = scmp.ge.s32.totalorder %s38_s8, 4  }
0x1328   :  { %37 = sbr.rel (!%p35_p4) target bundleno = 14 (0xe), region = 171 }

</bundles_post_ra>
